<compile_context>
chip_gen: v6e
topology: v6e:2x2x1
jax: 0.10.0
libtpu: 0.0.40
codegen_flags: <defaults>
</compile_context>

<pallas_src>
import functools

import jax
import jax.numpy as jnp
import numpy as np
from jax.experimental import pallas as pl
from jax.experimental.pallas import tpu as pltpu


# ----------------------------------------------------------------------------
# Helpers
# ----------------------------------------------------------------------------
def _layer_norm(x, g, b, eps=1e-5):
    # Single-pass variance (mean(x*x) - mu*mu): drops a full-tile subtract and lets
    # the two cross-lane reductions issue together (XLU-friendly).
    mu = jnp.mean(x, axis=-1, keepdims=True)
    ms = jnp.mean(x * x, axis=-1, keepdims=True)
    var = jnp.maximum(ms - mu * mu, 0.0)
    return (x - mu) * jax.lax.rsqrt(var + eps) * g + b


def _vmem_budget_bytes():
    """~75% of physical VMEM (128 MiB on v5e/v6e, 64 MiB on v7x), with fallback."""
    try:
        cap = int(pltpu.get_tpu_info().vmem_capacity_bytes)
    except Exception:
        cap = 64 * 1024 * 1024
    return max(32 * 1024 * 1024, min(cap * 3 // 4, 112 * 1024 * 1024))


def _auto_block_b(B, K, D, H, vmem_budget):
    """Largest divisor of B whose working set fits the VMEM budget, keeping >=2 blocks."""
    # Per-layer bf16 weights (qkv + proj + fc1 + fc2), double-buffered by the pipeline.
    layer_w_bytes = 2 * 2 * (D * 3 * D + D * D + D * H + H * D)
    # Rough per-row footprint: f32 residual + bf16 ctx scratch, double-buffered f32
    # in/out blocks, and the big transients (qkv f32, q/k/v bf16 copies, MLP hidden f32).
    per_row_bytes = (4 * D) + (2 * D) + 2 * (4 * D) + 2 * (4 * D) + 4 * (3 * D + H) + 2 * (3 * D)
    avail = max(vmem_budget - layer_w_bytes - (2 << 20), per_row_bytes * K)
    max_rows = max(K, avail // per_row_bytes)
    cap_b = max(1, int(max_rows // K))
    if B >= 2:
        cap_b = min(cap_b, B // 2)   # keep >=2 batch blocks (v7x has 2 TCs/chip)
    cap_b = min(cap_b, B)
    for cand in range(cap_b, 0, -1):
        if B % cand == 0:
            return cand
    return 1


# ----------------------------------------------------------------------------
# Pallas kernel: one (batch-block, layer) grid step of the RerankTransformer.
#   grid = (num_batch_blocks, depth); depth is the inner ("arbitrary") axis.
#   The f32 residual stream is carried across the depth axis in VMEM scratch.
# ----------------------------------------------------------------------------
def rerank_kernel(
    h0_ref,       # (Bb, K, D)  f32   input-mapped activations (E->D done in wrapper)
    ln1_g_ref,    # (1, 1, D)
    ln1_b_ref,    # (1, 1, D)
    qkv_w_ref,    # (1, D, 3D)  bf16  current layer
    proj_w_ref,   # (1, D, D)   bf16
    proj_b_ref,   # (1, 1, D)
    ln2_g_ref,    # (1, 1, D)
    ln2_b_ref,    # (1, 1, D)
    fc1_w_ref,    # (1, D, H)   bf16
    fc1_b_ref,    # (1, 1, H)
    fc2_w_ref,    # (1, H, D)   bf16
    fc2_b_ref,    # (1, 1, D)
    fln_g_ref,    # (1, D)
    fln_b_ref,    # (1, D)
    normx_ref,    # out: (Bb, K, D) f32
    h_ref,        # scratch: (Bb*K, D) f32  residual stream, persists across depth
    ctx_ref,      # scratch: (Bb*K, D) bf16 per-head context staging (fused proj)
    *,
    num_heads,
    compute_dtype,
):
    layer = pl.program_id(1)
    depth = pl.num_programs(1)

    Bb, K, D = h0_ref.shape
    M = Bb * K
    head_dim = D // num_heads
    scale = 1.0 / float(np.sqrt(head_dim))
    f32 = jnp.float32

    # ---- new batch block: load the mapped activations into the residual scratch ----
    @pl.when(layer == 0)
    def _():
        h_ref[...] = h0_ref[...].reshape(M, D)

    h = h_ref[...]                                                    # (M, D) f32

    # ---- multi-head self-attention (pre-LN) ----
    hn = _layer_norm(h, ln1_g_ref[0], ln1_b_ref[0])
    qkv = jnp.dot(hn.astype(compute_dtype), qkv_w_ref[0],
                  preferred_element_type=f32)                         # (M, 3D) f32
    # Scale applied once to the whole q tensor (not per head).
    q3 = (qkv[:, :D] * scale).reshape(Bb, K, D).astype(compute_dtype)
    k3 = qkv[:, D:2 * D].reshape(Bb, K, D).astype(compute_dtype)
    v3 = qkv[:, 2 * D:].reshape(Bb, K, D).astype(compute_dtype)

    for hh in range(num_heads):                       # static unroll over heads
        lo = hh * head_dim
        hi = lo + head_dim
        s = jnp.einsum('bqd,bkd->bqk', q3[:, :, lo:hi], k3[:, :, lo:hi],
                       preferred_element_type=f32)                    # (Bb, K, K) f32
        s = s - jnp.max(s, axis=-1, keepdims=True)
        p = jnp.exp(s)
        # approx reciprocal: ~2^-12 rel. error, below the bf16 weight noise floor.
        inv = pl.reciprocal(jnp.sum(p, axis=-1, keepdims=True), approx=True)
        att = (p * inv).astype(compute_dtype)
        ctx = jnp.einsum('bqk,bkd->bqd', att, v3[:, :, lo:hi],
                         preferred_element_type=f32)                  # (Bb, K, hd)
        # Stage this head's context into its lane-slice of the (M, D) scratch.
        ctx_ref[:, lo:hi] = ctx.reshape(M, head_dim).astype(compute_dtype)

    # Single full-depth output projection (one (M,D)@(D,D) MXU contraction).
    attn_out = jnp.dot(ctx_ref[...], proj_w_ref[0], preferred_element_type=f32)
    h = h + attn_out + proj_b_ref[0]      # dropout / drop_path are 0.0 -> identity

    # ---- MLP block (pre-LN) ----
    hn2 = _layer_norm(h, ln2_g_ref[0], ln2_b_ref[0])
    m = jnp.dot(hn2.astype(compute_dtype), fc1_w_ref[0],
                preferred_element_type=f32) + fc1_b_ref[0]
    m = jax.nn.gelu(m, approximate=True)  # tanh GELU -> EUP slot (erf poly is VPU-heavy)
    m = jnp.dot(m.astype(compute_dtype), fc2_w_ref[0],
                preferred_element_type=f32) + fc2_b_ref[0]
    h = h + m

    h_ref[...] = h

    # ---- finalize: final LN + L2 normalization of token features ----
    @pl.when(layer == depth - 1)
    def _():
        hf = _layer_norm(h, fln_g_ref[...], fln_b_ref[...])
        inv_nrm = jax.lax.rsqrt(
            jnp.maximum(jnp.sum(hf * hf, axis=-1, keepdims=True), 1e-24))
        normx_ref[...] = (hf * inv_nrm).reshape(Bb, K, D).astype(normx_ref.dtype)


# ----------------------------------------------------------------------------
# Wrapper: one RerankTransformer branch.
# ----------------------------------------------------------------------------
def rerank_forward(params, x, *, block_b=None):
    B, K, E = x.shape
    D = params["map_w"].shape[1]
    depth = params["qkv_w"].shape[0]
    H = params["fc1_w"].shape[2]
    num_heads = int(params["num_heads"])
    assert D % num_heads == 0

    # Input mapping (embed_dim -> topk_dim) hoisted out of the kernel: used only once
    # per token, so keeping map_w / x resident across the depth axis wasted VMEM + DMA.
    h0 = (jnp.dot(x.reshape(B * K, E).astype(jnp.bfloat16), params["map_w"],
                  preferred_element_type=jnp.float32).reshape(B, K, D)
          + params["map_b"][None, :, :])

    vmem_budget = _vmem_budget_bytes()
    if block_b is None:
        block_b = _auto_block_b(B, K, D, H, vmem_budget)
    assert B % block_b == 0
    nb = B // block_b

    # Per-layer streamed weights: block index depends on the depth grid axis.
    in_specs = [
        pl.BlockSpec((block_b, K, D), lambda b, l: (b, 0, 0)),   # h0
        pl.BlockSpec((1, 1, D),       lambda b, l: (l, 0, 0)),   # ln1_g
        pl.BlockSpec((1, 1, D),       lambda b, l: (l, 0, 0)),   # ln1_b
        pl.BlockSpec((1, D, 3 * D),   lambda b, l: (l, 0, 0)),   # qkv_w
        pl.BlockSpec((1, D, D),       lambda b, l: (l, 0, 0)),   # proj_w
        pl.BlockSpec((1, 1, D),       lambda b, l: (l, 0, 0)),   # proj_b
        pl.BlockSpec((1, 1, D),       lambda b, l: (l, 0, 0)),   # ln2_g
        pl.BlockSpec((1, 1, D),       lambda b, l: (l, 0, 0)),   # ln2_b
        pl.BlockSpec((1, D, H),       lambda b, l: (l, 0, 0)),   # fc1_w
        pl.BlockSpec((1, 1, H),       lambda b, l: (l, 0, 0)),   # fc1_b
        pl.BlockSpec((1, H, D),       lambda b, l: (l, 0, 0)),   # fc2_w
        pl.BlockSpec((1, 1, D),       lambda b, l: (l, 0, 0)),   # fc2_b
        pl.BlockSpec((1, D),          lambda b, l: (0, 0)),      # fln_g
        pl.BlockSpec((1, D),          lambda b, l: (0, 0)),      # fln_b
    ]
    out_specs = pl.BlockSpec((block_b, K, D), lambda b, l: (b, 0, 0))
    out_shape = jax.ShapeDtypeStruct((B, K, D), jnp.float32)

    kernel = functools.partial(
        rerank_kernel, num_heads=num_heads, compute_dtype=jnp.bfloat16)

    norm_x = pl.pallas_call(
        kernel,
        out_shape=out_shape,
        grid=(nb, depth),
        in_specs=in_specs,
        out_specs=out_specs,
        scratch_shapes=[pltpu.VMEM((block_b * K, D), jnp.float32),
                        pltpu.VMEM((block_b * K, D), jnp.bfloat16)],
        compiler_params=pltpu.CompilerParams(
            dimension_semantics=("parallel", "arbitrary"),
            vmem_limit_bytes=int(vmem_budget),
        ),
    )(
        h0,
        params["ln1_g"], params["ln1_b"],
        params["qkv_w"],
        params["proj_w"], params["proj_b"],
        params["ln2_g"], params["ln2_b"],
        params["fc1_w"], params["fc1_b"],
        params["fc2_w"], params["fc2_b"],
        params["fln_g"], params["fln_b"],
    )

    # sim: query token (index 0) vs every candidate token — tiny einsum, done in
    # the wrapper so the kernel's outputs stay lane-dense.
    sim = jnp.einsum('bkd,bd->bk', norm_x, norm_x[:, 0, :])
    return sim, norm_x       # sim: (B, K), norm_x: (B, K, D)


# ----------------------------------------------------------------------------
# Deterministic parameter construction (weights bf16, norms/biases f32).
# ----------------------------------------------------------------------------
def make_rerank_params(key, *, embed_dim, topk_dim, depth, num_heads, mlp_ratio):
    D = topk_dim
    H = int(D * mlp_ratio)
    ks = jax.random.split(key, 5)
    std = 0.02
    wdt = jnp.bfloat16
    return {
        "num_heads": num_heads,
        "map_w": (std * jax.random.normal(ks[0], (embed_dim, D), jnp.float32)).astype(wdt),
        "map_b": jnp.zeros((1, D), jnp.float32),
        "ln1_g": jnp.ones((depth, 1, D), jnp.float32),
        "ln1_b": jnp.zeros((depth, 1, D), jnp.float32),
        "qkv_w": (std * jax.random.normal(ks[1], (depth, D, 3 * D), jnp.float32)).astype(wdt),
        "proj_w": (std * jax.random.normal(ks[2], (depth, D, D), jnp.float32)).astype(wdt),
        "proj_b": jnp.zeros((depth, 1, D), jnp.float32),
        "ln2_g": jnp.ones((depth, 1, D), jnp.float32),
        "ln2_b": jnp.zeros((depth, 1, D), jnp.float32),
        "fc1_w": (std * jax.random.normal(ks[3], (depth, D, H), jnp.float32)).astype(wdt),
        "fc1_b": jnp.zeros((depth, 1, H), jnp.float32),
        "fc2_w": (std * jax.random.normal(ks[4], (depth, H, D), jnp.float32)).astype(wdt),
        "fc2_b": jnp.zeros((depth, 1, D), jnp.float32),
        "fln_g": jnp.ones((1, D), jnp.float32),
        "fln_b": jnp.zeros((1, D), jnp.float32),
    }


# ----------------------------------------------------------------------------
# MutualRerankTransformer (two independent RerankTransformer branches).
# ----------------------------------------------------------------------------
class MutualRerankTransformerPallas:
    def __init__(self, topk_i2t, topk_t2i, topk_dim=16, embed_dim=32, depth=2,
                 num_heads=2, mlp_ratio=4.0, key=None, block_b=None):
        if key is None:
            key = jax.random.PRNGKey(0)
        k1, k2 = jax.random.split(key)
        self.topk_i2t = topk_i2t
        self.topk_t2i = topk_t2i
        self.tau = 0.07
        self.margin = 0.2
        self.block_b = block_b
        common = dict(embed_dim=embed_dim, topk_dim=topk_dim, depth=depth,
                      num_heads=num_heads, mlp_ratio=mlp_ratio)
        self.params_i2t = make_rerank_params(k1, **common)
        self.params_t2i = make_rerank_params(k2, **common)

    def _branch(self, params, x, A_mat):
        sim, norm_x = rerank_forward(params, x, block_b=self.block_b)
        # Small heads / losses kept as plain-JAX glue (tiny reductions).
        # TODO(synk): loss heads synthesized; numerical match with the PyTorch
        #             RerankTransformer heads is unverified.
        exp_sim = jnp.exp(sim / self.tau)
        mse_loss = jnp.mean((sim - A_mat) ** 2)
        hinge_loss = jnp.mean(
            jnp.maximum(0.0, self.margin - sim[:, 0:1] + sim[:, 1:]))
        return exp_sim, mse_loss, hinge_loss, sim, norm_x

    def __call__(self, x_topk_i2t, x_topk_t2i, A_mat_i2t, A_mat_t2i,
                 topk_indices_i2t=None, topk_indices_t2i=None):
        out_i2t = self._branch(self.params_i2t, x_topk_i2t, A_mat_i2t)
        out_t2i = self._branch(self.params_t2i, x_topk_t2i, A_mat_t2i)
        return out_i2t, out_t2i


# ----------------------------------------------------------------------------
# Demo / smoke test.
# ----------------------------------------------------------------------------
if __name__ == "__main__":
    B = 4
    TOPK_I2T = 8
    TOPK_T2I = 8
    EMBED_DIM = 32   # stands in for 2048
    TOPK_DIM = 16    # stands in for 512
    DEPTH = 2        # stands in for 6
    NUM_HEADS = 2    # stands in for 4

    root = jax.random.PRNGKey(0)
    k_model, k_xi, k_xt, k_ai, k_at = jax.random.split(root, 5)

    # block_b=None -> auto-pick (keeps >=2 batch blocks, so both grid axes are exercised).
    model = MutualRerankTransformerPallas(
        topk_i2t=TOPK_I2T, topk_t2i=TOPK_T2I, topk_dim=TOPK_DIM,
        embed_dim=EMBED_DIM, depth=DEPTH, num_heads=NUM_HEADS,
        key=k_model, block_b=None)

    x_topk_i2t = jax.random.normal(k_xi, (B, TOPK_I2T, EMBED_DIM), jnp.float32)
    x_topk_t2i = jax.random.normal(k_xt, (B, TOPK_T2I, EMBED_DIM), jnp.float32)
    A_mat_i2t = jax.random.uniform(k_ai, (B, TOPK_I2T), jnp.float32)
    A_mat_t2i = jax.random.uniform(k_at, (B, TOPK_T2I), jnp.float32)

    (out_i2t, out_t2i) = model(x_topk_i2t, x_topk_t2i, A_mat_i2t, A_mat_t2i)
    exp_sim_i2t, mse_i2t, hinge_i2t, sim_i2t, norm_x_i2t = out_i2t
    exp_sim_t2i, mse_t2i, hinge_t2i, sim_t2i, norm_x_t2i = out_t2i

    jax.block_until_ready(
        (exp_sim_i2t, mse_i2t, hinge_i2t, sim_i2t, norm_x_i2t,
         exp_sim_t2i, mse_t2i, hinge_t2i, sim_t2i, norm_x_t2i))

    assert sim_i2t.shape == (B, TOPK_I2T)
    assert norm_x_i2t.shape == (B, TOPK_I2T, TOPK_DIM)
    assert sim_t2i.shape == (B, TOPK_T2I)
    assert norm_x_t2i.shape == (B, TOPK_T2I, TOPK_DIM)
    assert bool(jnp.all(jnp.isfinite(sim_i2t)))
    assert bool(jnp.all(jnp.isfinite(norm_x_i2t)))
    assert bool(jnp.all(jnp.isfinite(sim_t2i)))
    assert bool(jnp.all(jnp.isfinite(norm_x_t2i)))
    # Token-feature rows are unit-norm; query-vs-query similarity is 1.
    assert bool(jnp.allclose(jnp.sum(norm_x_i2t ** 2, -1), 1.0, atol=1e-3))
    assert bool(jnp.allclose(sim_i2t[:, 0], 1.0, atol=1e-3))

    print("KERNEL_OK")
</pallas_src>

<mosaic_0001>
module attributes {stable_mosaic.version = 11 : i64} {
  func.func @rerank_kernel(%arg0: i32, %arg1: i32, %arg2: memref<2x8x16xf32, #tpu.memory_space<vmem>>, %arg3: memref<1x1x16xf32, #tpu.memory_space<vmem>>, %arg4: memref<1x1x16xf32, #tpu.memory_space<vmem>>, %arg5: memref<1x16x48xbf16, #tpu.memory_space<vmem>>, %arg6: memref<1x16x16xbf16, #tpu.memory_space<vmem>>, %arg7: memref<1x1x16xf32, #tpu.memory_space<vmem>>, %arg8: memref<1x1x16xf32, #tpu.memory_space<vmem>>, %arg9: memref<1x1x16xf32, #tpu.memory_space<vmem>>, %arg10: memref<1x16x64xbf16, #tpu.memory_space<vmem>>, %arg11: memref<1x1x64xf32, #tpu.memory_space<vmem>>, %arg12: memref<1x64x16xbf16, #tpu.memory_space<vmem>>, %arg13: memref<1x1x16xf32, #tpu.memory_space<vmem>>, %arg14: memref<1x16xf32, #tpu.memory_space<vmem>>, %arg15: memref<1x16xf32, #tpu.memory_space<vmem>>, %arg16: memref<2x8x16xf32, #tpu.memory_space<vmem>>, %arg17: memref<16x16xf32, #tpu.memory_space<vmem>>, %arg18: memref<16x16xbf16, #tpu.memory_space<vmem>>) attributes {dimension_semantics = [#tpu.dimension_semantics<parallel>, #tpu.dimension_semantics<arbitrary>], iteration_bounds = array<i64: 2, 2>, scalar_prefetch = 0 : i64, scratch_operands = 2 : i64, tpu.core_type = #tpu.core_type<tc>, window_params = [{transform_indices = @transform_0, window_bounds = array<i64: 2, 8, 16>}, {transform_indices = @transform_1, window_bounds = array<i64: 1, 1, 16>}, {transform_indices = @transform_2, window_bounds = array<i64: 1, 1, 16>}, {transform_indices = @transform_3, window_bounds = array<i64: 1, 16, 48>}, {transform_indices = @transform_4, window_bounds = array<i64: 1, 16, 16>}, {transform_indices = @transform_5, window_bounds = array<i64: 1, 1, 16>}, {transform_indices = @transform_6, window_bounds = array<i64: 1, 1, 16>}, {transform_indices = @transform_7, window_bounds = array<i64: 1, 1, 16>}, {transform_indices = @transform_8, window_bounds = array<i64: 1, 16, 64>}, {transform_indices = @transform_9, window_bounds = array<i64: 1, 1, 64>}, {transform_indices = @transform_10, window_bounds = array<i64: 1, 64, 16>}, {transform_indices = @transform_11, window_bounds = array<i64: 1, 1, 16>}, {pipeline_mode = #tpu.pipeline_mode<synchronous>, transform_indices = @transform_12, window_bounds = array<i64: 1, 16>}, {pipeline_mode = #tpu.pipeline_mode<synchronous>, transform_indices = @transform_13, window_bounds = array<i64: 1, 16>}, {transform_indices = @transform_14, window_bounds = array<i64: 2, 8, 16>}]} {
    %c0_i32 = arith.constant 0 : i32
    %0 = arith.cmpi eq, %arg1, %c0_i32 : i32
    %1 = arith.extui %0 : i1 to i32
    %c0_i32_0 = arith.constant 0 : i32
    %2 = arith.cmpi ne, %1, %c0_i32_0 : i32
    scf.if %2 {
      %c0_71 = arith.constant 0 : index
      %c0_72 = arith.constant 0 : index
      %c0_73 = arith.constant 0 : index
      %156 = vector.load %arg2[%c0_71, %c0_72, %c0_73] : memref<2x8x16xf32, #tpu.memory_space<vmem>>, vector<2x8x16xf32>
      %157 = vector.shape_cast %156 : vector<2x8x16xf32> to vector<16x16xf32>
      %c0_74 = arith.constant 0 : index
      %c0_75 = arith.constant 0 : index
      %158 = vector.load %arg17[%c0_74, %c0_75] : memref<16x16xf32, #tpu.memory_space<vmem>>, vector<16x16xf32>
      tpu.vector_store %arg17[%c0_74, %c0_75], %157 {strides = array<i32>} : memref<16x16xf32, #tpu.memory_space<vmem>>, vector<16x16xf32>,
    } else {
    }
    %c0 = arith.constant 0 : index
    %c0_1 = arith.constant 0 : index
    %3 = vector.load %arg17[%c0, %c0_1] : memref<16x16xf32, #tpu.memory_space<vmem>>, vector<16x16xf32>
    %c0_2 = arith.constant 0 : index
    %c0_3 = arith.constant 0 : index
    %c0_4 = arith.constant 0 : index
    %4 = vector.load %arg3[%c0_2, %c0_3, %c0_4] : memref<1x1x16xf32, #tpu.memory_space<vmem>>, vector<1x1x16xf32>
    %5 = vector.shape_cast %4 : vector<1x1x16xf32> to vector<1x16xf32>
    %c0_5 = arith.constant 0 : index
    %c0_6 = arith.constant 0 : index
    %c0_7 = arith.constant 0 : index
    %6 = vector.load %arg4[%c0_5, %c0_6, %c0_7] : memref<1x1x16xf32, #tpu.memory_space<vmem>>, vector<1x1x16xf32>
    %7 = vector.shape_cast %6 : vector<1x1x16xf32> to vector<1x16xf32>
    %cst = arith.constant dense<0.000000e+00> : vector<16xf32>
    %8 = vector.multi_reduction <add>, %3, %cst [1] : vector<16x16xf32> to vector<16xf32>
    %9 = vector.shape_cast %8 : vector<16xf32> to vector<16x1xf32>
    %cst_8 = arith.constant 1.600000e+01 : f32
    %10 = vector.broadcast %cst_8 : f32 to vector<16x1xf32>
    %11 = arith.divf %9, %10 : vector<16x1xf32>
    %12 = arith.mulf %3, %3 : vector<16x16xf32>
    %cst_9 = arith.constant dense<0.000000e+00> : vector<16xf32>
    %13 = vector.multi_reduction <add>, %12, %cst_9 [1] : vector<16x16xf32> to vector<16xf32>
    %14 = vector.shape_cast %13 : vector<16xf32> to vector<16x1xf32>
    %cst_10 = arith.constant 1.600000e+01 : f32
    %15 = vector.broadcast %cst_10 : f32 to vector<16x1xf32>
    %16 = arith.divf %14, %15 : vector<16x1xf32>
    %17 = arith.mulf %11, %11 : vector<16x1xf32>
    %18 = arith.subf %16, %17 : vector<16x1xf32>
    %cst_11 = arith.constant 0.000000e+00 : f32
    %19 = vector.broadcast %cst_11 : f32 to vector<16x1xf32>
    %20 = arith.maximumf %18, %19 : vector<16x1xf32>
    %21 = vector.broadcast %11 : vector<16x1xf32> to vector<16x16xf32>
    %22 = arith.subf %3, %21 : vector<16x16xf32>
    %cst_12 = arith.constant 9.99999974E-6 : f32
    %23 = vector.broadcast %cst_12 : f32 to vector<16x1xf32>
    %24 = arith.addf %20, %23 : vector<16x1xf32>
    %25 = math.rsqrt %24 : vector<16x1xf32>
    %26 = vector.broadcast %25 : vector<16x1xf32> to vector<16x16xf32>
    %27 = arith.mulf %22, %26 : vector<16x16xf32>
    %28 = vector.broadcast %5 : vector<1x16xf32> to vector<16x16xf32>
    %29 = arith.mulf %27, %28 : vector<16x16xf32>
    %30 = vector.broadcast %7 : vector<1x16xf32> to vector<16x16xf32>
    %31 = arith.addf %29, %30 : vector<16x16xf32>
    %32 = arith.truncf %31 : vector<16x16xf32> to vector<16x16xbf16>
    %c0_13 = arith.constant 0 : index
    %c0_14 = arith.constant 0 : index
    %c0_15 = arith.constant 0 : index
    %33 = vector.load %arg5[%c0_13, %c0_14, %c0_15] : memref<1x16x48xbf16, #tpu.memory_space<vmem>>, vector<1x16x48xbf16>
    %34 = vector.shape_cast %33 : vector<1x16x48xbf16> to vector<16x48xbf16>
    %cst_16 = arith.constant dense<0.000000e+00> : vector<16x48xf32>
    %35 = tpu.matmul %32, %34, %cst_16 {dimension_numbers = #tpu.dot_dimension_numbers<[1], [0], [0], [1], [0, 0, 1, 1], [], []>} : vector<16x16xbf16>, vector<16x48xbf16>, vector<16x48xf32> -> vector<16x48xf32>
    %36 = vector.extract_strided_slice %35 {offsets = [0, 0], sizes = [16, 16], strides = [1, 1]} : vector<16x48xf32> to vector<16x16xf32>
    %cst_17 = arith.constant 0.353553385 : f32
    %37 = vector.broadcast %cst_17 : f32 to vector<16x16xf32>
    %38 = arith.mulf %36, %37 : vector<16x16xf32>
    %39 = vector.shape_cast %38 : vector<16x16xf32> to vector<2x8x16xf32>
    %40 = arith.truncf %39 : vector<2x8x16xf32> to vector<2x8x16xbf16>
    %41 = vector.extract_strided_slice %35 {offsets = [0, 16], sizes = [16, 16], strides = [1, 1]} : vector<16x48xf32> to vector<16x16xf32>
    %42 = vector.shape_cast %41 : vector<16x16xf32> to vector<2x8x16xf32>
    %43 = arith.truncf %42 : vector<2x8x16xf32> to vector<2x8x16xbf16>
    %44 = vector.extract_strided_slice %35 {offsets = [0, 32], sizes = [16, 16], strides = [1, 1]} : vector<16x48xf32> to vector<16x16xf32>
    %45 = vector.shape_cast %44 : vector<16x16xf32> to vector<2x8x16xf32>
    %46 = arith.truncf %45 : vector<2x8x16xf32> to vector<2x8x16xbf16>
    %47 = vector.extract_strided_slice %40 {offsets = [0, 0, 0], sizes = [2, 8, 8], strides = [1, 1, 1]} : vector<2x8x16xbf16> to vector<2x8x8xbf16>
    %48 = vector.extract_strided_slice %43 {offsets = [0, 0, 0], sizes = [2, 8, 8], strides = [1, 1, 1]} : vector<2x8x16xbf16> to vector<2x8x8xbf16>
    "tpu.trace_start"() <{level = 10 : i32, message = "bqd,bkd->bqk"}> : () -> ()
    %cst_18 = arith.constant dense<0.000000e+00> : vector<2x8x8xf32>
    %49 = tpu.matmul %47, %48, %cst_18 {dimension_numbers = #tpu.dot_dimension_numbers<[2], [2], [1], [1], [0, 0, 0, 1, 1, 1], [0], [0]>} : vector<2x8x8xbf16>, vector<2x8x8xbf16>, vector<2x8x8xf32> -> vector<2x8x8xf32>
    "tpu.trace_stop"() : () -> ()
    %cst_19 = arith.constant dense<0xFF800000> : vector<2x8xf32>
    %50 = vector.multi_reduction <maximumf>, %49, %cst_19 [2] : vector<2x8x8xf32> to vector<2x8xf32>
    %51 = vector.shape_cast %50 : vector<2x8xf32> to vector<2x8x1xf32>
    %52 = vector.broadcast %51 : vector<2x8x1xf32> to vector<2x8x8xf32>
    %53 = arith.subf %49, %52 : vector<2x8x8xf32>
    %54 = math.exp %53 : vector<2x8x8xf32>
    %cst_20 = arith.constant dense<0.000000e+00> : vector<2x8xf32>
    %55 = vector.multi_reduction <add>, %54, %cst_20 [2] : vector<2x8x8xf32> to vector<2x8xf32>
    %56 = vector.shape_cast %55 : vector<2x8xf32> to vector<2x8x1xf32>
    %57 = tpu.reciprocal %56 {approx = true} : vector<2x8x1xf32> -> vector<2x8x1xf32>
    %58 = vector.broadcast %57 : vector<2x8x1xf32> to vector<2x8x8xf32>
    %59 = arith.mulf %54, %58 : vector<2x8x8xf32>
    %60 = arith.truncf %59 : vector<2x8x8xf32> to vector<2x8x8xbf16>
    %61 = vector.extract_strided_slice %46 {offsets = [0, 0, 0], sizes = [2, 8, 8], strides = [1, 1, 1]} : vector<2x8x16xbf16> to vector<2x8x8xbf16>
    "tpu.trace_start"() <{level = 10 : i32, message = "bqk,bkd->bqd"}> : () -> ()
    %cst_21 = arith.constant dense<0.000000e+00> : vector<2x8x8xf32>
    %62 = tpu.matmul %60, %61, %cst_21 {dimension_numbers = #tpu.dot_dimension_numbers<[2], [1], [1], [2], [0, 0, 0, 1, 1, 2], [0], [0]>} : vector<2x8x8xbf16>, vector<2x8x8xbf16>, vector<2x8x8xf32> -> vector<2x8x8xf32>
    "tpu.trace_stop"() : () -> ()
    %63 = vector.shape_cast %62 : vector<2x8x8xf32> to vector<16x8xf32>
    %64 = arith.truncf %63 : vector<16x8xf32> to vector<16x8xbf16>
    %c0_22 = arith.constant 0 : index
    %c0_23 = arith.constant 0 : index
    %65 = vector.load %arg18[%c0_22, %c0_23] : memref<16x16xbf16, #tpu.memory_space<vmem>>, vector<16x8xbf16>
    tpu.vector_store %arg18[%c0_22, %c0_23], %64 {strides = array<i32>} : memref<16x16xbf16, #tpu.memory_space<vmem>>, vector<16x8xbf16>,
    %66 = vector.extract_strided_slice %40 {offsets = [0, 0, 8], sizes = [2, 8, 8], strides = [1, 1, 1]} : vector<2x8x16xbf16> to vector<2x8x8xbf16>
    %67 = vector.extract_strided_slice %43 {offsets = [0, 0, 8], sizes = [2, 8, 8], strides = [1, 1, 1]} : vector<2x8x16xbf16> to vector<2x8x8xbf16>
    "tpu.trace_start"() <{level = 10 : i32, message = "bqd,bkd->bqk"}> : () -> ()
    %cst_24 = arith.constant dense<0.000000e+00> : vector<2x8x8xf32>
    %68 = tpu.matmul %66, %67, %cst_24 {dimension_numbers = #tpu.dot_dimension_numbers<[2], [2], [1], [1], [0, 0, 0, 1, 1, 1], [0], [0]>} : vector<2x8x8xbf16>, vector<2x8x8xbf16>, vector<2x8x8xf32> -> vector<2x8x8xf32>
    "tpu.trace_stop"() : () -> ()
    %cst_25 = arith.constant dense<0xFF800000> : vector<2x8xf32>
    %69 = vector.multi_reduction <maximumf>, %68, %cst_25 [2] : vector<2x8x8xf32> to vector<2x8xf32>
    %70 = vector.shape_cast %69 : vector<2x8xf32> to vector<2x8x1xf32>
    %71 = vector.broadcast %70 : vector<2x8x1xf32> to vector<2x8x8xf32>
    %72 = arith.subf %68, %71 : vector<2x8x8xf32>
    %73 = math.exp %72 : vector<2x8x8xf32>
    %cst_26 = arith.constant dense<0.000000e+00> : vector<2x8xf32>
    %74 = vector.multi_reduction <add>, %73, %cst_26 [2] : vector<2x8x8xf32> to vector<2x8xf32>
    %75 = vector.shape_cast %74 : vector<2x8xf32> to vector<2x8x1xf32>
    %76 = tpu.reciprocal %75 {approx = true} : vector<2x8x1xf32> -> vector<2x8x1xf32>
    %77 = vector.broadcast %76 : vector<2x8x1xf32> to vector<2x8x8xf32>
    %78 = arith.mulf %73, %77 : vector<2x8x8xf32>
    %79 = arith.truncf %78 : vector<2x8x8xf32> to vector<2x8x8xbf16>
    %80 = vector.extract_strided_slice %46 {offsets = [0, 0, 8], sizes = [2, 8, 8], strides = [1, 1, 1]} : vector<2x8x16xbf16> to vector<2x8x8xbf16>
    "tpu.trace_start"() <{level = 10 : i32, message = "bqk,bkd->bqd"}> : () -> ()
    %cst_27 = arith.constant dense<0.000000e+00> : vector<2x8x8xf32>
    %81 = tpu.matmul %79, %80, %cst_27 {dimension_numbers = #tpu.dot_dimension_numbers<[2], [1], [1], [2], [0, 0, 0, 1, 1, 2], [0], [0]>} : vector<2x8x8xbf16>, vector<2x8x8xbf16>, vector<2x8x8xf32> -> vector<2x8x8xf32>
    "tpu.trace_stop"() : () -> ()
    %82 = vector.shape_cast %81 : vector<2x8x8xf32> to vector<16x8xf32>
    %83 = arith.truncf %82 : vector<16x8xf32> to vector<16x8xbf16>
    %c0_28 = arith.constant 0 : index
    %c8 = arith.constant 8 : index
    %84 = vector.load %arg18[%c0_28, %c8] : memref<16x16xbf16, #tpu.memory_space<vmem>>, vector<16x8xbf16>
    tpu.vector_store %arg18[%c0_28, %c8], %83 {strides = array<i32>} : memref<16x16xbf16, #tpu.memory_space<vmem>>, vector<16x8xbf16>,
    %c0_29 = arith.constant 0 : index
    %c0_30 = arith.constant 0 : index
    %85 = vector.load %arg18[%c0_29, %c0_30] : memref<16x16xbf16, #tpu.memory_space<vmem>>, vector<16x16xbf16>
    %c0_31 = arith.constant 0 : index
    %c0_32 = arith.constant 0 : index
    %c0_33 = arith.constant 0 : index
    %86 = vector.load %arg6[%c0_31, %c0_32, %c0_33] : memref<1x16x16xbf16, #tpu.memory_space<vmem>>, vector<1x16x16xbf16>
    %87 = vector.shape_cast %86 : vector<1x16x16xbf16> to vector<16x16xbf16>
    %cst_34 = arith.constant dense<0.000000e+00> : vector<16x16xf32>
    %88 = tpu.matmul %85, %87, %cst_34 {dimension_numbers = #tpu.dot_dimension_numbers<[1], [0], [0], [1], [0, 0, 1, 1], [], []>} : vector<16x16xbf16>, vector<16x16xbf16>, vector<16x16xf32> -> vector<16x16xf32>
    %89 = arith.addf %3, %88 : vector<16x16xf32>
    %c0_35 = arith.constant 0 : index
    %c0_36 = arith.constant 0 : index
    %c0_37 = arith.constant 0 : index
    %90 = vector.load %arg7[%c0_35, %c0_36, %c0_37] : memref<1x1x16xf32, #tpu.memory_space<vmem>>, vector<1x1x16xf32>
    %91 = vector.shape_cast %90 : vector<1x1x16xf32> to vector<1x16xf32>
    %92 = vector.broadcast %91 : vector<1x16xf32> to vector<16x16xf32>
    %93 = arith.addf %89, %92 : vector<16x16xf32>
    %c0_38 = arith.constant 0 : index
    %c0_39 = arith.constant 0 : index
    %c0_40 = arith.constant 0 : index
    %94 = vector.load %arg8[%c0_38, %c0_39, %c0_40] : memref<1x1x16xf32, #tpu.memory_space<vmem>>, vector<1x1x16xf32>
    %95 = vector.shape_cast %94 : vector<1x1x16xf32> to vector<1x16xf32>
    %c0_41 = arith.constant 0 : index
    %c0_42 = arith.constant 0 : index
    %c0_43 = arith.constant 0 : index
    %96 = vector.load %arg9[%c0_41, %c0_42, %c0_43] : memref<1x1x16xf32, #tpu.memory_space<vmem>>, vector<1x1x16xf32>
    %97 = vector.shape_cast %96 : vector<1x1x16xf32> to vector<1x16xf32>
    %cst_44 = arith.constant dense<0.000000e+00> : vector<16xf32>
    %98 = vector.multi_reduction <add>, %93, %cst_44 [1] : vector<16x16xf32> to vector<16xf32>
    %99 = vector.shape_cast %98 : vector<16xf32> to vector<16x1xf32>
    %cst_45 = arith.constant 1.600000e+01 : f32
    %100 = vector.broadcast %cst_45 : f32 to vector<16x1xf32>
    %101 = arith.divf %99, %100 : vector<16x1xf32>
    %102 = arith.mulf %93, %93 : vector<16x16xf32>
    %cst_46 = arith.constant dense<0.000000e+00> : vector<16xf32>
    %103 = vector.multi_reduction <add>, %102, %cst_46 [1] : vector<16x16xf32> to vector<16xf32>
    %104 = vector.shape_cast %103 : vector<16xf32> to vector<16x1xf32>
    %cst_47 = arith.constant 1.600000e+01 : f32
    %105 = vector.broadcast %cst_47 : f32 to vector<16x1xf32>
    %106 = arith.divf %104, %105 : vector<16x1xf32>
    %107 = arith.mulf %101, %101 : vector<16x1xf32>
    %108 = arith.subf %106, %107 : vector<16x1xf32>
    %cst_48 = arith.constant 0.000000e+00 : f32
    %109 = vector.broadcast %cst_48 : f32 to vector<16x1xf32>
    %110 = arith.maximumf %108, %109 : vector<16x1xf32>
    %111 = vector.broadcast %101 : vector<16x1xf32> to vector<16x16xf32>
    %112 = arith.subf %93, %111 : vector<16x16xf32>
    %cst_49 = arith.constant 9.99999974E-6 : f32
    %113 = vector.broadcast %cst_49 : f32 to vector<16x1xf32>
    %114 = arith.addf %110, %113 : vector<16x1xf32>
    %115 = math.rsqrt %114 : vector<16x1xf32>
    %116 = vector.broadcast %115 : vector<16x1xf32> to vector<16x16xf32>
    %117 = arith.mulf %112, %116 : vector<16x16xf32>
    %118 = vector.broadcast %95 : vector<1x16xf32> to vector<16x16xf32>
    %119 = arith.mulf %117, %118 : vector<16x16xf32>
    %120 = vector.broadcast %97 : vector<1x16xf32> to vector<16x16xf32>
    %121 = arith.addf %119, %120 : vector<16x16xf32>
    %122 = arith.truncf %121 : vector<16x16xf32> to vector<16x16xbf16>
    %c0_50 = arith.constant 0 : index
    %c0_51 = arith.constant 0 : index
    %c0_52 = arith.constant 0 : index
    %123 = vector.load %arg10[%c0_50, %c0_51, %c0_52] : memref<1x16x64xbf16, #tpu.memory_space<vmem>>, vector<1x16x64xbf16>
    %124 = vector.shape_cast %123 : vector<1x16x64xbf16> to vector<16x64xbf16>
    %cst_53 = arith.constant dense<0.000000e+00> : vector<16x64xf32>
    %125 = tpu.matmul %122, %124, %cst_53 {dimension_numbers = #tpu.dot_dimension_numbers<[1], [0], [0], [1], [0, 0, 1, 1], [], []>} : vector<16x16xbf16>, vector<16x64xbf16>, vector<16x64xf32> -> vector<16x64xf32>
    %c0_54 = arith.constant 0 : index
    %c0_55 = arith.constant 0 : index
    %c0_56 = arith.constant 0 : index
    %126 = vector.load %arg11[%c0_54, %c0_55, %c0_56] : memref<1x1x64xf32, #tpu.memory_space<vmem>>, vector<1x1x64xf32>
    %127 = vector.shape_cast %126 : vector<1x1x64xf32> to vector<1x64xf32>
    %128 = vector.broadcast %127 : vector<1x64xf32> to vector<16x64xf32>
    %129 = arith.addf %125, %128 : vector<16x64xf32>
    %130 = arith.mulf %129, %129 : vector<16x64xf32>
    %131 = arith.mulf %129, %130 : vector<16x64xf32>
    %cst_57 = arith.constant 4.471500e-02 : f32
    %132 = vector.broadcast %cst_57 : f32 to vector<16x64xf32>
    %133 = arith.mulf %132, %131 : vector<16x64xf32>
    %134 = arith.addf %129, %133 : vector<16x64xf32>
    %cst_58 = arith.constant 0.797884583 : f32
    %135 = vector.broadcast %cst_58 : f32 to vector<16x64xf32>
    %136 = arith.mulf %135, %134 : vector<16x64xf32>
    %137 = math.tanh %136 : vector<16x64xf32>
    %cst_59 = arith.constant 1.000000e+00 : f32
    %138 = vector.broadcast %cst_59 : f32 to vector<16x64xf32>
    %139 = arith.addf %138, %137 : vector<16x64xf32>
    %cst_60 = arith.constant 5.000000e-01 : f32
    %140 = vector.broadcast %cst_60 : f32 to vector<16x64xf32>
    %141 = arith.mulf %140, %139 : vector<16x64xf32>
    %142 = arith.mulf %129, %141 : vector<16x64xf32>
    %143 = arith.truncf %142 : vector<16x64xf32> to vector<16x64xbf16>
    %c0_61 = arith.constant 0 : index
    %c0_62 = arith.constant 0 : index
    %c0_63 = arith.constant 0 : index
    %144 = vector.load %arg12[%c0_61, %c0_62, %c0_63] : memref<1x64x16xbf16, #tpu.memory_space<vmem>>, vector<1x64x16xbf16>
    %145 = vector.shape_cast %144 : vector<1x64x16xbf16> to vector<64x16xbf16>
    %cst_64 = arith.constant dense<0.000000e+00> : vector<16x16xf32>
    %146 = tpu.matmul %143, %145, %cst_64 {dimension_numbers = #tpu.dot_dimension_numbers<[1], [0], [0], [1], [0, 0, 1, 1], [], []>} : vector<16x64xbf16>, vector<64x16xbf16>, vector<16x16xf32> -> vector<16x16xf32>
    %c0_65 = arith.constant 0 : index
    %c0_66 = arith.constant 0 : index
    %c0_67 = arith.constant 0 : index
    %147 = vector.load %arg13[%c0_65, %c0_66, %c0_67] : memref<1x1x16xf32, #tpu.memory_space<vmem>>, vector<1x1x16xf32>
    %148 = vector.shape_cast %147 : vector<1x1x16xf32> to vector<1x16xf32>
    %149 = vector.broadcast %148 : vector<1x16xf32> to vector<16x16xf32>
    %150 = arith.addf %146, %149 : vector<16x16xf32>
    %151 = arith.addf %93, %150 : vector<16x16xf32>
    %c0_68 = arith.constant 0 : index
    %c0_69 = arith.constant 0 : index
    %152 = vector.load %arg17[%c0_68, %c0_69] : memref<16x16xf32, #tpu.memory_space<vmem>>, vector<16x16xf32>
    tpu.vector_store %arg17[%c0_68, %c0_69], %151 {strides = array<i32>} : memref<16x16xf32, #tpu.memory_space<vmem>>, vector<16x16xf32>,
    %c1_i32 = arith.constant 1 : i32
    %153 = arith.cmpi eq, %arg1, %c1_i32 : i32
    %154 = arith.extui %153 : i1 to i32
    %c0_i32_70 = arith.constant 0 : i32
    %155 = arith.cmpi ne, %154, %c0_i32_70 : i32
    scf.if %155 {
      %c0_71 = arith.constant 0 : index
      %c0_72 = arith.constant 0 : index
      %156 = vector.load %arg14[%c0_71, %c0_72] : memref<1x16xf32, #tpu.memory_space<vmem>>, vector<1x16xf32>
      %c0_73 = arith.constant 0 : index
      %c0_74 = arith.constant 0 : index
      %157 = vector.load %arg15[%c0_73, %c0_74] : memref<1x16xf32, #tpu.memory_space<vmem>>, vector<1x16xf32>
      %cst_75 = arith.constant dense<0.000000e+00> : vector<16xf32>
      %158 = vector.multi_reduction <add>, %151, %cst_75 [1] : vector<16x16xf32> to vector<16xf32>
      %159 = vector.shape_cast %158 : vector<16xf32> to vector<16x1xf32>
      %cst_76 = arith.constant 1.600000e+01 : f32
      %160 = vector.broadcast %cst_76 : f32 to vector<16x1xf32>
      %161 = arith.divf %159, %160 : vector<16x1xf32>
      %162 = arith.mulf %151, %151 : vector<16x16xf32>
      %cst_77 = arith.constant dense<0.000000e+00> : vector<16xf32>
      %163 = vector.multi_reduction <add>, %162, %cst_77 [1] : vector<16x16xf32> to vector<16xf32>
      %164 = vector.shape_cast %163 : vector<16xf32> to vector<16x1xf32>
      %cst_78 = arith.constant 1.600000e+01 : f32
      %165 = vector.broadcast %cst_78 : f32 to vector<16x1xf32>
      %166 = arith.divf %164, %165 : vector<16x1xf32>
      %167 = arith.mulf %161, %161 : vector<16x1xf32>
      %168 = arith.subf %166, %167 : vector<16x1xf32>
      %cst_79 = arith.constant 0.000000e+00 : f32
      %169 = vector.broadcast %cst_79 : f32 to vector<16x1xf32>
      %170 = arith.maximumf %168, %169 : vector<16x1xf32>
      %171 = vector.broadcast %161 : vector<16x1xf32> to vector<16x16xf32>
      %172 = arith.subf %151, %171 : vector<16x16xf32>
      %cst_80 = arith.constant 9.99999974E-6 : f32
      %173 = vector.broadcast %cst_80 : f32 to vector<16x1xf32>
      %174 = arith.addf %170, %173 : vector<16x1xf32>
      %175 = math.rsqrt %174 : vector<16x1xf32>
      %176 = vector.broadcast %175 : vector<16x1xf32> to vector<16x16xf32>
      %177 = arith.mulf %172, %176 : vector<16x16xf32>
      %178 = vector.broadcast %156 : vector<1x16xf32> to vector<16x16xf32>
      %179 = arith.mulf %177, %178 : vector<16x16xf32>
      %180 = vector.broadcast %157 : vector<1x16xf32> to vector<16x16xf32>
      %181 = arith.addf %179, %180 : vector<16x16xf32>
      %182 = arith.mulf %181, %181 : vector<16x16xf32>
      %cst_81 = arith.constant dense<0.000000e+00> : vector<16xf32>
      %183 = vector.multi_reduction <add>, %182, %cst_81 [1] : vector<16x16xf32> to vector<16xf32>
      %184 = vector.shape_cast %183 : vector<16xf32> to vector<16x1xf32>
      %cst_82 = arith.constant 1.000000e-24 : f32
      %185 = vector.broadcast %cst_82 : f32 to vector<16x1xf32>
      %186 = arith.maximumf %184, %185 : vector<16x1xf32>
      %187 = math.rsqrt %186 : vector<16x1xf32>
      %188 = vector.broadcast %187 : vector<16x1xf32> to vector<16x16xf32>
      %189 = arith.mulf %181, %188 : vector<16x16xf32>
      %190 = vector.shape_cast %189 : vector<16x16xf32> to vector<2x8x16xf32>
      %c0_83 = arith.constant 0 : index
      %c0_84 = arith.constant 0 : index
      %c0_85 = arith.constant 0 : index
      %191 = vector.load %arg16[%c0_83, %c0_84, %c0_85] : memref<2x8x16xf32, #tpu.memory_space<vmem>>, vector<2x8x16xf32>
      tpu.vector_store %arg16[%c0_83, %c0_84, %c0_85], %190 {strides = array<i32>} : memref<2x8x16xf32, #tpu.memory_space<vmem>>, vector<2x8x16xf32>,
    } else {
    }
    return
  }
  func.func @transform_0(%arg0: i32, %arg1: i32) -> (i32, i32, i32) {
    %c0_i32 = arith.constant 0 : i32
    %c0_i32_0 = arith.constant 0 : i32
    %c0_i32_1 = arith.constant 0 : i32
    return %arg0, %c0_i32, %c0_i32_0 : i32, i32, i32
  }
  func.func @transform_1(%arg0: i32, %arg1: i32) -> (i32, i32, i32) {
    %c0_i32 = arith.constant 0 : i32
    %c0_i32_0 = arith.constant 0 : i32
    %c0_i32_1 = arith.constant 0 : i32
    return %arg1, %c0_i32, %c0_i32_0 : i32, i32, i32
  }
  func.func @transform_2(%arg0: i32, %arg1: i32) -> (i32, i32, i32) {
    %c0_i32 = arith.constant 0 : i32
    %c0_i32_0 = arith.constant 0 : i32
    %c0_i32_1 = arith.constant 0 : i32
    return %arg1, %c0_i32, %c0_i32_0 : i32, i32, i32
  }
  func.func @transform_3(%arg0: i32, %arg1: i32) -> (i32, i32, i32) {
    %c0_i32 = arith.constant 0 : i32
    %c0_i32_0 = arith.constant 0 : i32
    %c0_i32_1 = arith.constant 0 : i32
    return %arg1, %c0_i32, %c0_i32_0 : i32, i32, i32
  }
  func.func @transform_4(%arg0: i32, %arg1: i32) -> (i32, i32, i32) {
    %c0_i32 = arith.constant 0 : i32
    %c0_i32_0 = arith.constant 0 : i32
    %c0_i32_1 = arith.constant 0 : i32
    return %arg1, %c0_i32, %c0_i32_0 : i32, i32, i32
  }
  func.func @transform_5(%arg0: i32, %arg1: i32) -> (i32, i32, i32) {
    %c0_i32 = arith.constant 0 : i32
    %c0_i32_0 = arith.constant 0 : i32
    %c0_i32_1 = arith.constant 0 : i32
    return %arg1, %c0_i32, %c0_i32_0 : i32, i32, i32
  }
  func.func @transform_6(%arg0: i32, %arg1: i32) -> (i32, i32, i32) {
    %c0_i32 = arith.constant 0 : i32
    %c0_i32_0 = arith.constant 0 : i32
    %c0_i32_1 = arith.constant 0 : i32
    return %arg1, %c0_i32, %c0_i32_0 : i32, i32, i32
  }
  func.func @transform_7(%arg0: i32, %arg1: i32) -> (i32, i32, i32) {
    %c0_i32 = arith.constant 0 : i32
    %c0_i32_0 = arith.constant 0 : i32
    %c0_i32_1 = arith.constant 0 : i32
    return %arg1, %c0_i32, %c0_i32_0 : i32, i32, i32
  }
  func.func @transform_8(%arg0: i32, %arg1: i32) -> (i32, i32, i32) {
    %c0_i32 = arith.constant 0 : i32
    %c0_i32_0 = arith.constant 0 : i32
    %c0_i32_1 = arith.constant 0 : i32
    return %arg1, %c0_i32, %c0_i32_0 : i32, i32, i32
  }
  func.func @transform_9(%arg0: i32, %arg1: i32) -> (i32, i32, i32) {
    %c0_i32 = arith.constant 0 : i32
    %c0_i32_0 = arith.constant 0 : i32
    %c0_i32_1 = arith.constant 0 : i32
    return %arg1, %c0_i32, %c0_i32_0 : i32, i32, i32
  }
  func.func @transform_10(%arg0: i32, %arg1: i32) -> (i32, i32, i32) {
    %c0_i32 = arith.constant 0 : i32
    %c0_i32_0 = arith.constant 0 : i32
    %c0_i32_1 = arith.constant 0 : i32
    return %arg1, %c0_i32, %c0_i32_0 : i32, i32, i32
  }
  func.func @transform_11(%arg0: i32, %arg1: i32) -> (i32, i32, i32) {
    %c0_i32 = arith.constant 0 : i32
    %c0_i32_0 = arith.constant 0 : i32
    %c0_i32_1 = arith.constant 0 : i32
    return %arg1, %c0_i32, %c0_i32_0 : i32, i32, i32
  }
  func.func @transform_12(%arg0: i32, %arg1: i32) -> (i32, i32) {
    %c0_i32 = arith.constant 0 : i32
    %c0_i32_0 = arith.constant 0 : i32
    %c0_i32_1 = arith.constant 0 : i32
    return %c0_i32, %c0_i32_0 : i32, i32
  }
  func.func @transform_13(%arg0: i32, %arg1: i32) -> (i32, i32) {
    %c0_i32 = arith.constant 0 : i32
    %c0_i32_0 = arith.constant 0 : i32
    %c0_i32_1 = arith.constant 0 : i32
    return %c0_i32, %c0_i32_0 : i32, i32
  }
  func.func @transform_14(%arg0: i32, %arg1: i32) -> (i32, i32, i32) {
    %c0_i32 = arith.constant 0 : i32
    %c0_i32_0 = arith.constant 0 : i32
    %c0_i32_1 = arith.constant 0 : i32
    return %arg0, %c0_i32, %c0_i32_0 : i32, i32, i32
  }
}

</mosaic_0001>

<bundles_post_ra>
// kernel: tpu_custom_call.1
= control target key start
LH: loop header
LB: loop body
LE: loop exit
PB: predicated region body
PF: predicated region fallthrough
CT: control target
= control target key end

     0   :  { %s3152_s0 = inlined_call_operand.vmem [shape: f32[4,8,16], index: 0, kind: input, shape index: {}]   ;;  %s3153_s1 = inlined_call_operand.hbm [shape: f32[2,1,16], index: 1, kind: input, shape index: {}]   ;;  %s3154_s2 = inlined_call_operand.vmem [shape: f32[2,1,16], index: 2, kind: input, shape index: {}]   ;;  %s3155_s3 = inlined_call_operand.vmem [shape: bf16[2,16,48], index: 3, kind: input, shape index: {}]   ;;  %s3156_s4 = inlined_call_operand.vmem [shape: bf16[2,16,16], index: 4, kind: input, shape index: {}]   ;;  %s3157_s5 = inlined_call_operand.hbm [shape: f32[2,1,16], index: 5, kind: input, shape index: {}]   ;;  %s3158_s6 = inlined_call_operand.hbm [shape: f32[2,1,16], index: 6, kind: input, shape index: {}]   ;;  %s3159_s7 = inlined_call_operand.hbm [shape: f32[2,1,16], index: 7, kind: input, shape index: {}]   ;;  %s3160_s8 = inlined_call_operand.vmem [shape: bf16[2,16,64], index: 8, kind: input, shape index: {}]   ;;  %s3161_s9 = inlined_call_operand.hbm [shape: f32[2,1,64], index: 9, kind: input, shape index: {}]   ;;  %s3162_s10 = inlined_call_operand.vmem [shape: bf16[2,64,16], index: 10, kind: input, shape index: {}]   ;;  %s3163_s11 = inlined_call_operand.vmem [shape: f32[2,1,16], index: 11, kind: input, shape index: {}]   ;;  %s3164_s12 = inlined_call_operand.vmem [shape: f32[1,16], index: 12, kind: input, shape index: {}]   ;;  %s3165_s13 = inlined_call_operand.vmem [shape: f32[1,16], index: 13, kind: input, shape index: {}]   ;;  %s3166_s14 = inlined_call_operand.hbm [shape: f32[4,8,16], index: 14, kind: output, shape index: {}]  }
   0x1   :  { %3182 = sst [smem:[#allocation31_spill]] %s3152_s0 }
   0x2   :  { %3183 = sst [smem:[#allocation32_spill]] %s3153_s1 }
   0x3   :  { %3184 = sst [smem:[#allocation33_spill]] %s3156_s4 }
   0x4   :  { %3185 = sst [smem:[#allocation34_spill]] %s3157_s5 }
   0x5   :  { %3186 = sst [smem:[#allocation35_spill]] %s3158_s6 }
   0x6   :  { %3187 = sst [smem:[#allocation36_spill]] %s3159_s7 }
   0x7   :  { %3188 = sst [smem:[#allocation37_spill]] %s3160_s8 }
   0x8   :  { %3189 = sst [smem:[#allocation38_spill]] %s3161_s9 }
   0x9   :  { %3190 = sst [smem:[#allocation39_spill]] %s3162_s10 }
   0xa   :  { %3191 = sst [smem:[#allocation40_spill]] %s3163_s11 }
   0xb   :  { %3192 = sst [smem:[#allocation41_spill]] %s3164_s12 }
   0xc   :  { %3193 = sst [smem:[#allocation42_spill]] %s3165_s13 }
   0xd   :  { %3194 = sst [smem:[#allocation43_spill]] %s3166_s14 }
   0xe   :  { %19 = vsyncpa [#allocation5], 0 }
   0xf   :  { %21 = vsyncpa [#allocation5 + $0x1], 0 }
  0x10   :  { %22 = vsyncpa [#allocation8], 0 }
  0x11   :  { %24 = vsyncpa [#allocation8 + $0x1], 0 }
  0x12   :  { %25 = vsyncpa [#allocation11], 0 }
  0x13   :  { %27 = vsyncpa [#allocation11 + $0x1], 0 }
  0x14   :  { %28 = vsyncpa [#allocation6], 0 }
  0x15   :  { %30 = vsyncpa [#allocation6 + $0x1], 0  ;;  %s2658_s29 = smov 0   ;;  %s2660_s30 = smov 0  }
  0x16   :  { %s2662_s15 = smov 0   ;;  %s2664_s16 = smov 0  }
  0x17   :  { %s2666_s17 = smov 0   ;;  %s2668_s18 = smov 0  }
  0x18   :  { %s2670_s19 = smov 0   ;;  %s2672_s20 = smov 0  }
  0x19   :  { %s2674_s21 = smov 0   ;;  %s2676_s22 = smov 0  }
  0x1a   :  { %s2678_s23 = smov 0  }
  0x1b LB: > { %3195 = sst [smem:[#allocation18_spill]] %s2526_s29  ;;  %s2712_s24 = sadd.s32 4294967295, %s2566_s23   ;;  %s2566_s23 = sphi %s2678_s23, %s36_s23   ;;  %s2562_s22 = sphi %s2676_s22, %s3249_s22   ;;  %s2558_s21 = sphi %s2674_s21, %s3248_s21   ;;  %s2554_s20 = sphi %s2672_s20, %s3247_s20   ;;  %s2550_s19 = sphi %s2670_s19, %s3246_s19   ;;  %s2546_s18 = sphi %s2668_s18, %s3245_s18   ;;  %s2542_s17 = sphi %s2666_s17, %s3244_s17   ;;  %s2538_s16 = sphi %s2664_s16, %s3243_s16   ;;  %s2534_s15 = sphi %s2662_s15, %s3242_s15   ;;  %s2530_s30 = sphi %s2660_s30, %s3251_s30   ;;  %s2526_s29 = sphi %s2658_s29, %s3250_s29  }
  0x1c   : > { %3196 = sst [smem:[#allocation19_spill]] %s2534_s15  ;;  %s1949_s25 = sadd.s32 4294967294, %s2566_s23  }
  0x1d   : > { %3197 = sst [smem:[#allocation20_spill]] %s2542_s17  ;;  %s45_s26 = sadd.s32 1, %s2558_s21 }
  0x1e   : > { %3198 = sst [smem:[#allocation21_spill]] %s2546_s18  ;;  %s48_s27 = sadd.s32 1, %s2562_s22 }
  0x1f   : > { %3199 = sst [smem:[#allocation22_spill]] %s2558_s21  ;;  %p46_p0 = scmp.ge.s32.totalorder %s45_s26, 2 }
  0x20   : > { %3200 = sst [smem:[#allocation23_spill]] %s2562_s22  ;;  %s81_s28 = sadd.s32 1, %s2546_s18 }
  0x21   : > { %3201 = sst [smem:[#allocation24_spill]] %s2566_s23  ;;  %p88_p1 = scmp.ne.s32.totalorder %s2546_s18, %s2542_s17 }
  0x22   : > { %p89_p2 = scmp.eq.s32.totalorder %s2566_s23, 0  ;;  %s3253_s26 = smov (%p46_p0, %s45_s26), 0 }
  0x23   : > { %3202 = sst [smem:[#allocation25_spill]] %s3253_s26  ;;  %s3255_s27 = smov (!%p46_p0, %s48_s27), %s2562_s22 }
  0x24   : > { %s78_s14 = ssub.s32 %s2558_s21, %s3253_s26  ;;  %p2726_p3 = por %p89_p2, %p88_p1 }
  0x25   : > { %p50_p4 = scmp.ge.s32.totalorder %s3255_s27, 2  ;;  %p79_p5 = scmp.eq.s32.totalorder %s78_s14, 0 }
  0x26   : > { %p94_p6 = scmp.ne.s32.totalorder %s2542_s17, %s2538_s16  ;;  %p95_p7 = scmp.eq.s32.totalorder %s2712_s24, 0 }
  0x27   : > { %s3257_s27 = smov (%p50_p4, %s3255_s27), 0  ;;  %s409_s10 = sadd.s32 1, %s2534_s15 }
  0x28   : > { %3204 = sst [smem:[#allocation26_spill]] %s3257_s27  ;;  %p2737_p8 = por %p95_p7, %p94_p6 }
  0x29   : > { %s2735_s12 = scalar_select %p79_p5, %s2546_s18, %s81_s28  }
  0x2a   : > { %s406_s11 = ssub.s32 %s2562_s22, %s3257_s27  ;;  %p419_p10 = scmp.ne.s32.totalorder %s2534_s15, %s2530_s30 }
  0x2b   : > { %3205 = sst [smem:[#allocation27_spill]] %s2735_s12  ;;  %p407_p9 = scmp.eq.s32.totalorder %s406_s11, 0 }
  0x2c   : > { %p420_p11 = scmp.eq.s32.totalorder %s2712_s24, 3  ;;  %p425_p13 = scmp.ne.s32.totalorder %s2530_s30, %s2526_s29 }
  0x2d   : > { %s2748_s14 = scalar_select %p407_p9, %s2534_s15, %s409_s10  }
  0x2e   : > { %p2750_p12 = por %p420_p11, %p419_p10  ;;  %p426_p0 = scmp.eq.s32.totalorder %s1949_s25, 3 }
  0x2f   : > { %3207 = sst [smem:[#allocation28_spill]] %s2748_s14  ;;  %p2155_p1 = scmp.lt.s32.totalorder %s2566_s23, 4 }
  0x30   : > { %s3208_s16 = scalar_select %p2750_p12, 1, 0 }
  0x31   : > { %s2758_s28 = sand.u32 1, %s2546_s18   ;;  %p2760_p2 = por %p426_p0, %p425_p13 }
  0x32   : > { %3209 = sst [smem:[#allocation29_spill]] %s3208_s16  ;;  %s2765_s11 = sshll.u32 %s2558_s21, 4 }
  0x33   : > { %s3210_s27 = scalar_select %p2760_p2, 1, 0 }
  0x34   : > { %p2769_p4 = pnand %p2155_p1, %p2726_p3  ;;  %s500_s22 = sand.u32 1, %s2566_s23  }
  0x35   : > { %3211 = sst [smem:[#allocation30_spill]] %s3210_s27  ;;  %s503_s14 = scalar_lea.vmem [#allocation7], %s2758_s28 }
  0x36   : > { %s3213_s5 = sld [smem:[#allocation34_spill]]  ;;  %s510_s15 = sshll.u32 %s503_s14, 4  ;;  %s511_s15 = int_to_ptr.vmem [resolvable:$true] %s510_s15 }
  0x37   : > { %p1957_p5 = scmp.ge.s32.totalorder %s2566_s23, 1  ;;  %p588_p6 = scmp.lt.s32.totalorder %s2566_s23, 5 }
  0x38   : > { %s2781_s27 = scalar_lea.sflag [#allocation8], %s500_s22  ;;  %p2785_p7 = pneg %p2769_p4 }
  0x39   : > { %s2311_s21 = scalar_lea.vmem %s511_s15, 16  ;;  %s2568_s12 = smov [#allocation7]  }
  0x3a   : > { %p2312_p3 = scmp.ne.s32.totalorder %s511_s15, %s2311_s21  ;;  %s2316_s25 = sshll.u32 %s2568_s12, 4  ;;  %s2317_s25 = int_to_ptr.vmem [resolvable:$false] %s2316_s25 }
  0x3b   : > { %s2318_s14 = scalar_lea.vmem %s2317_s25, 32  ;;  %p2319_p11 = scmp.lt.s32.totalorder %s511_s15, %s2317_s25 }
  0x3c   : > { %s508_s18 = scalar_lea.hbm %s3213_s5, %s2765_s11  ;;  %p2314_p9 = pnand %p2312_p3, %p2785_p7 }
  0x3d   : > { %p2320_p13 = scmp.lt.s32.totalorder %s2318_s14, %s2311_s21 }
  0x3e   : > { %p2315_p10 = pneg %p2314_p9 }
  0x3f   : > { %p2321_p0 = por %p2320_p13, %p2319_p11 }
  0x41   : > { %p2322_p1 = pnand %p2321_p0, %p2315_p10 }
  0x43   : > { %2325 = shalt.err (!%p2322_p1)
}
  0x44   : > { %2141 = dma.hbm_to_vmem [thread:$0]  (!%p2769_p4), %s508_s18, 16, %s511_s15, %s2781_s27  }
  0x45   : > { %p2798_p3 = pnand %p1957_p5, %p588_p6  ;;  %s3216_s7 = sld [smem:[#allocation36_spill]] }
  0x46   : > { %s537_s5 = scalar_lea.vmem [#allocation10], %s2758_s28  ;;  %s2807_s16 = scalar_lea.sflag [#allocation11], %s500_s22 }
  0x47   : > { %s544_s29 = sshll.u32 %s537_s5, 4  ;;  %s2569_s15 = smov [#allocation10]   ;;  %s545_s29 = int_to_ptr.vmem [resolvable:$true] %s544_s29 }
  0x48   : > { %s2339_s8 = scalar_lea.vmem %s545_s29, 16  ;;  %s2344_s18 = sshll.u32 %s2569_s15, 4  ;;  %s2345_s18 = int_to_ptr.vmem [resolvable:$false] %s2344_s18 }
  0x49   : > { %p2340_p9 = scmp.ne.s32.totalorder %s545_s29, %s2339_s8  ;;  %s2346_s23 = scalar_lea.vmem %s2345_s18, 32 }
  0x4a   : > { %p2347_p5 = scmp.lt.s32.totalorder %s545_s29, %s2345_s18  ;;  %p2348_p6 = scmp.lt.s32.totalorder %s2346_s23, %s2339_s8 }
  0x4b   : > { %s542_s14 = scalar_lea.hbm %s3216_s7, %s2765_s11  ;;  %p2342_p10 = pnand %p2340_p9, %p2785_p7 }
  0x4c   : > { %p2349_p13 = por %p2348_p6, %p2347_p5 }
  0x4d   : > { %p2343_p11 = pneg %p2342_p10 }
  0x4f   : > { %p2350_p0 = pnand %p2349_p13, %p2343_p11 }
  0x51   : > { %2353 = shalt.err (!%p2350_p0)
}
  0x52   : > { %2147 = dma.hbm_to_vmem [thread:$0]  (!%p2769_p4), %s542_s14, 16, %s545_s29, %s2807_s16  }
  0x53   : > { %s3217_s1 = sld [smem:[#allocation32_spill]]  ;;  %s464_s21 = scalar_lea.vmem [#allocation4], %s2758_s28 }
  0x54   : > { %s471_s15 = sshll.u32 %s464_s21, 4  ;;  %s462_s18 = scalar_lea.sflag [#allocation5], %s2758_s28  ;;  %s472_s15 = int_to_ptr.vmem [resolvable:$true] %s471_s15 }
  0x55   : > { %s2367_s8 = scalar_lea.vmem %s472_s15, 16  ;;  %s2570_s23 = smov [#allocation4]  }
  0x56   : > { %p2368_p1 = scmp.ne.s32.totalorder %s472_s15, %s2367_s8  ;;  %s2372_s7 = sshll.u32 %s2570_s23, 4  ;;  %s2373_s7 = int_to_ptr.vmem [resolvable:$false] %s2372_s7 }
  0x57   : > { %s2374_s4 = scalar_lea.vmem %s2373_s7, 32  ;;  %p2375_p11 = scmp.lt.s32.totalorder %s472_s15, %s2373_s7 }
  0x58   : > { %p2370_p9 = pnand %p2368_p1, %p2785_p7  ;;  %p2376_p5 = scmp.lt.s32.totalorder %s2374_s4, %s2367_s8 }
  0x59   : > { %s469_s25 = scalar_lea.hbm %s3217_s1, %s2765_s11 }
  0x5a   : > { %p2371_p10 = pneg %p2370_p9  ;;  %p2377_p6 = por %p2376_p5, %p2375_p11 }
  0x5c   : > { %p2378_p13 = pnand %p2377_p6, %p2371_p10 }
  0x5e   : > { %2381 = shalt.err (!%p2378_p13)
}
  0x5f   : > { %2138 = dma.hbm_to_vmem [thread:$0]  (!%p2769_p4), %s469_s25, 16, %s472_s15, %s462_s18  }
  0x60   : > { %s3218_s6 = sld [smem:[#allocation35_spill]]  ;;  %s520_s22 = scalar_lea.vmem [#allocation9], %s2758_s28 }
  0x61   : > { %s527_s21 = sshll.u32 %s520_s22, 4  ;;  %s2571_s4 = smov [#allocation9]   ;;  %s528_s21 = int_to_ptr.vmem [resolvable:$true] %s527_s21 }
  0x62   : > { %s2395_s23 = scalar_lea.vmem %s528_s21, 16  ;;  %s2400_s7 = sshll.u32 %s2571_s4, 4  ;;  %s2401_s7 = int_to_ptr.vmem [resolvable:$false] %s2400_s7 }
  0x63   : > { %p2396_p0 = scmp.ne.s32.totalorder %s528_s21, %s2395_s23  ;;  %s2402_s8 = scalar_lea.vmem %s2401_s7, 32 }
  0x64   : > { %p2403_p10 = scmp.lt.s32.totalorder %s528_s21, %s2401_s7  ;;  %p2404_p11 = scmp.lt.s32.totalorder %s2402_s8, %s2395_s23 }
  0x65   : > { %p2398_p1 = pnand %p2396_p0, %p2785_p7 }
  0x66   : > { %s525_s5 = scalar_lea.hbm %s3218_s6, %s2765_s11  ;;  %p2405_p5 = por %p2404_p11, %p2403_p10 }
  0x67   : > { %p2399_p9 = pneg %p2398_p1 }
  0x69   : > { %p2406_p6 = pnand %p2405_p5, %p2399_p9 }
  0x6b   : > { %2409 = shalt.err (!%p2406_p6)
}
  0x6c   : > { %2144 = dma.hbm_to_vmem [thread:$0]  (!%p2769_p4), %s525_s5, 16, %s528_s21, %s2781_s27  }
  0x6d   : > { %s3219_s9 = sld [smem:[#allocation38_spill]]  ;;  %s562_s29 = scalar_lea.vmem [#allocation12], %s2758_s28 }
  0x6e   : > { %s569_s14 = sshll.u32 %s562_s29, 4  ;;  %s2572_s23 = smov [#allocation12]   ;;  %s570_s14 = int_to_ptr.vmem [resolvable:$true] %s569_s14 }
  0x6f   : > { %s2423_s22 = scalar_lea.vmem %s570_s14, 16  ;;  %s2428_s4 = sshll.u32 %s2572_s23, 4  ;;  %s2429_s4 = int_to_ptr.vmem [resolvable:$false] %s2428_s4 }
  0x70   : > { %p2424_p13 = scmp.ne.s32.totalorder %s570_s14, %s2423_s22  ;;  %s2430_s7 = scalar_lea.vmem %s2429_s4, 32 }
  0x71   : > { %p2431_p9 = scmp.lt.s32.totalorder %s570_s14, %s2429_s4  ;;  %p2432_p10 = scmp.lt.s32.totalorder %s2430_s7, %s2423_s22 }
  0x72   : > { %p2426_p0 = pnand %p2424_p13, %p2785_p7 }
  0x73   : > { %s567_s18 = scalar_lea.hbm %s3219_s9, %s2765_s11  ;;  %p2433_p11 = por %p2432_p10, %p2431_p9 }
  0x74   : > { %p2427_p1 = pneg %p2426_p0 }
  0x76   : > { %p2434_p5 = pnand %p2433_p11, %p2427_p1 }
  0x78   : > { %2437 = shalt.err (!%p2434_p5)
}
  0x79   : > { %2150 = dma.hbm_to_vmem [thread:$0]  (!%p2769_p4), %s567_s18, 16, %s570_s14, %s2807_s16  }
  0x7a   : > { %592 = sbr.rel (%p2798_p3) target bundleno = 3166 (0xc5e), region = 76  ;;  %s2847_s27 = sand.u32 (!%p2798_p3), 1, %s2542_s17  }
  0x7b   : > { %s595_s28 = scalar_lea.sflag (!%p2798_p3), [#allocation5], %s2847_s27 }
  0x7f   : > { %2509 = dma.done.wait (%p2737_p8), %s595_s28, 16  }
  0x80   : > { %2511 = vsyncadd (%p2737_p8), %s595_s28, 4294967280  ;;  %s602_s16 = sand.u32 1, %s2712_s24  }
  0x81   : > { %s603_s10 = scalar_lea.sflag [#allocation8], %s602_s16 }
  0x82   : > { %2513 = dma.done.wait (%p2737_p8), %s603_s10, 32  }
  0x83   : > { %2515 = vsyncadd (%p2737_p8), %s603_s10, 4294967264  ;;  %s619_s5 = scalar_lea.sflag [#allocation11], %s602_s16 }
  0x84   : > { %2517 = dma.done.wait (%p2737_p8), %s619_s5, 32  }
  0x85   : > { %2519 = vsyncadd (%p2737_p8), %s619_s5, 4294967264  ;;  %s3180_s24 = sand.u32 1, %s2530_s30   ;;  %s1959_s25 = sshll.u32 %s2554_s20, 1 }
  0x86   : > { %s1958_s8 = sshll.u32 %s3180_s24, 4  ;;  %p721_p4 = scmp.lt.s32.totalorder %s1959_s25, 3 }
  0x87   : > { %p726_p7 = scmp.lt.s32.totalorder %s2550_s19, 1  ;;  %s3220_s0 = sld [smem:[#allocation31_spill]] }
  0x88   : > { %s3259_s25 = smov (!%p721_p4, %s1959_s25), 3  ;;  %s3221_s21 = sld [smem:[#allocation33_spill]] }
  0x89   : > { %s2873_s15 = scalar_select %p726_p7, %s2550_s19, 1 }
  0x8a   : > { %s1960_s26 = sshll.u32 %s3259_s25, 3  ;;  %s3222_s29 = sld [smem:[#allocation37_spill]] }
  0x8b   : > { %s2883_s7 = sshll.u32 %s2873_s15, 3  ;;  %s2012_s28 = sshll.u32 %s2873_s15, 5 }
  0x8c   : > { %s733_s5 = scalar_lea.vmem %s3155_s3, %s2883_s7  ;;  %s3223_s4 = sld [smem:[#allocation39_spill]] }
  0x8d   : > { %s724_s14 = scalar_lea.vmem %s3220_s0, %s1960_s26  ;;  %s3224_s6 = sld [smem:[#allocation40_spill]] }
  0x8e   : > { %s738_s12 = scalar_lea.vmem %s3221_s21, %s2883_s7  ;;  %s629_s17 = scalar_lea.vmem [#allocation12], %s2847_s27 }
  0x8f   : > { %s2908_s16 = scalar_lea.vmem [#allocation13], %s1958_s8  ;;  %p1969_p8 = scmp.ne.s32.totalorder %s2550_s19, 0 }
  0x90   : > { %s743_s13 = scalar_lea.vmem %s3222_s29, %s2883_s7 }
  0x91   : > { %757 = sbr.rel (%p1969_p8) target bundleno = 152 (0x98), region = 100 }
  0x92   : > { %s2901_s11 = scalar_lea.vmem %s3223_s4, %s2012_s28 }
  0x93   : > { %s751_s9 = scalar_lea.vmem %s3224_s6, %s2873_s15 }
  0x96   : > { %v758_v0 = vld [vmem:[%s724_s14] sm:$0xff]  ;;  %vm760_vm0 = vcmask 130048   ;;  %v759_v1 = vld [vmem:[%s724_s14 + $0x8] sm:$0xff] }
  0x97   : > { %761 = vst.msk [vmem:[#allocation2] sm:$0xff] %vm760_vm0, %v758_v0  ;;  %762 = vst.msk [vmem:[#allocation2 + $0x8] sm:$0xff] %vm760_vm0, %v759_v1 }
  0x98 PF: > { %vm767_vm1 = vcmask 130048   ;;  %v2254_v10 = vld [vmem:[%s733_s5] sm:$0xff]   ;;  %v2573_v11 = vmov 0.0   ;;  %vm2574_vm2 = vmmov 0   ;;  %s3225_s0 = scalar_lea.vmem [#allocation4], %s2847_s27  ;;  %s3226_s21 = scalar_lea.vmem %s3154_s2, %s2873_s15  ;;  %vm879_vm3 = vcmask 64512  }
  0x99   : > { %2045 = vmatprep.subr.bf16.mxu0 %v2573_v11  ;;  %2047 = vmatprep.mubr.msk.bf16.mxu0 %vm2574_vm2, %v2573_v11  ;;  %v1970_v31 = vld [vmem:[%s3225_s0] ss:$0 sm:$0xff]  ;;  %s2575_s24 = smov 112   ;;  %s2576_s8 = smov 96   ;;  %vm1004_vm4 = vcmask 1043456   ;;  %vm1104_vm5 = vcmask 60416  }
  0x9a   : > { %2046 = vmatpush3.bf16.msra.mxu0 %v2254_v10  ;;  %2063 = vmatprep.subr.bf16.mxu1 %v2573_v11  ;;  %v1971_v36 = vld [vmem:[%s3226_s21] ss:$0 sm:$0xff]  ;;  %s2577_s14 = smov 104   ;;  %s2578_s4 = smov 120   ;;  %vm1341_vm6 = vcmask 126016   ;;  %vm1582_vm7 = vcmask 523264  }
  0x9b   : > { %2051 = vmatprep.subr.bf16.mxu0 %v2573_v11  ;;  %2065 = vmatprep.mubr.msk.bf16.mxu1 %vm2574_vm2, %v2573_v11  ;;  %s2579_s28 = smov 88   ;;  %s2580_s18 = smov 8  }
  0x9c   : > { %s3231_s7 = scalar_lea.vmem [#allocation10], %s2847_s27  ;;  %p2001_p3 = scmp.ne.s32.totalorder %s2550_s19, 1 }
  0x9d   : > { %s3233_s15 = sld [smem:[#allocation41_spill]] (!%p2001_p3) }
  0x9e   : > { %v2911_v2 = vld [vmem:[#allocation2] sm:$0xff]  ;;  %v2913_v3 = vld [vmem:[#allocation2 + $0x8] sm:$0xff]  ;;  %s3234_s1 = sld [smem:[#allocation42_spill]] (!%p2001_p3) }
  0x9f   : > { %v768_v4 = vsel %vm767_vm1, %v2911_v2, 0.0  ;;  %v777_v5 = vmul.f32 %v2911_v2, %v2911_v2  ;;  %v771_v6 = vsel %vm767_vm1, %v2913_v3, 0.0  ;;  %v778_v7 = vmul.f32 %v2913_v3, %v2913_v3 }
  0xa0   : > { %769 = vadd.xlane.f32.xlu0 %v768_v4 }
  0xa1   : > { %v779_v8 = vsel %vm767_vm1, %v777_v5, 0.0  ;;  %v782_v9 = vsel %vm767_vm1, %v778_v7, 0.0 }
  0xa2   : > { %780 = vadd.xlane.f32.xlu1 %v779_v8 }
  0xa4   : > { %772 = vadd.xlane.f32.xlu0 %v771_v6 }
  0xa6   : > { %783 = vadd.xlane.f32.xlu1 %v782_v9 }
 0x129   : > { %v770_v12 = vpop.xlane.xlu0 %769 }
 0x12a   : > { %v775_v13 = vmul.f32 0.0625, %v770_v12 }
 0x12b   : > { %v781_v14 = vpop.xlane.xlu1 %780 }
 0x12c   : > { %v787_v15 = vmul.f32 %v775_v13, %v775_v13  ;;  %v785_v16 = vmul.f32 0.0625, %v781_v14  ;;  %v793_v28 = vsub.f32 %v2911_v2, %v775_v13 }
 0x12d   : > { %v773_v17 = vpop.xlane.xlu0 %772 }
 0x12e   : > { %v789_v18 = vsub.f32 %v785_v16, %v787_v15  ;;  %v776_v19 = vmul.f32 0.0625, %v773_v17 }
 0x12f   : > { %v784_v20 = vpop.xlane.xlu1 %783 }
 0x130   : > { %v791_v21 = vmax.f32 %v789_v18, 0.0  ;;  %v788_v22 = vmul.f32 %v776_v19, %v776_v19  ;;  %v786_v23 = vmul.f32 0.0625, %v784_v20  ;;  %v794_v32 = vsub.f32 %v2913_v3, %v776_v19 }
 0x132   : > { %v795_v24 = vadd.f32 1e-05, %v791_v21  ;;  %v790_v25 = vsub.f32 %v786_v23, %v788_v22 }
 0x134   : > { %2262 = vrsqrt.f32 %v795_v24  ;;  %v792_v26 = vmax.f32 %v790_v25, 0.0 }
 0x136   : > { %v796_v27 = vadd.f32 1e-05, %v792_v26 }
 0x138   : > { %2264 = vrsqrt.f32 %v796_v27 }
 0x141   : > { %v2263_v29 = vpop.eup %2262 }
 0x142   : > { %v799_v30 = vmul.f32 %v2263_v29, %v793_v28 }
 0x144   : > { %v807_v35 = vmul.f32 %v1970_v31, %v799_v30 }
 0x145   : > { %v2265_v33 = vpop.eup %2264 }
 0x146   : > { %v800_v34 = vmul.f32 %v2265_v33, %v794_v32  ;;  %v815_v38 = vadd.f32 %v1971_v36, %v807_v35 }
 0x148   : > { %v808_v37 = vmul.f32 %v1970_v31, %v800_v34 }
 0x14a   : > { %v816_v39 = vadd.f32 %v1971_v36, %v808_v37 }
 0x14c   : > { %v817_v40 = vpack.c.bf16 %v816_v39, %v815_v38 }
 0x14e   : > { %2048 = vmatmul.mubr.msk.bf16.vlgmr.msra.gmra.mxu0 %vm767_vm1, %v817_v40 }
 0x14f   : > { %2053 = vmatprep.mubr.msk.bf16.mxu0 %vm2574_vm2, %v2573_v11 }
 0x20e   : > { %v863_v41 = vpop.f32.mrf.mxu0 }
 0x20f   : > { %v2944_v42 = vpack.c.bf16 %v863_v41, %v863_v41  ;;  %v870_v49 = vmul.f32 0.35355338, %v863_v41 }
 0x210   : > { %v2049_v43 = vpop.f32.mrf.mxu0 }
 0x211   : > { %877 = vrot.lane.b32.xlu0 %v2944_v42, %s2575_s24  ;;  %v872_v51 = vpack.c.bf16 %v870_v49, %v870_v49 }
 0x212   : > { %v866_v44 = vpop.f32.mrf.mxu0 }
 0x213   : > { %v2947_v45 = vpack.c.bf16 %v866_v44, %v866_v44  ;;  %v871_v53 = vmul.f32 0.35355338, %v866_v44 }
 0x214   : > { %v2050_v46 = vpop.f32.mrf.mxu0 }
 0x215   : > { %927 = vrot.lane.b32.xlu1 %v2947_v45, %s2575_s24  ;;  %v873_v54 = vpack.c.bf16 %v871_v53, %v871_v53 }
 0x283   : > { %v878_v47 = vpop.permute.xlu0 %877 }
 0x284   : > { %v884_v48 = vsel %vm879_vm3, %v878_v47, 0 }
 0x285   : > { %2052 = vmatpush3.bf16.xpose.msra.mxu0 %v884_v48 }
 0x286   : > { %2057 = vmatprep.subr.bf16.mxu0 %v2573_v11 }
 0x287   : > { %v928_v50 = vpop.permute.xlu1 %927 }
 0x288   : > { %v933_v52 = vsel %vm879_vm3, %v928_v50, 0 }
 0x28c   : > { %2054 = vmatmul.mubr.msk.bf16.vlgmr.msra.gmra.mxu0 %vm879_vm3, %v872_v51 }
 0x28d   : > { %2058 = vmatpush3.bf16.xpose.msra.mxu0 %v933_v52  ;;  %2059 = vmatprep.mubr.msk.bf16.mxu0 %vm2574_vm2, %v2573_v11 }
 0x28e   : > { %2069 = vmatprep.subr.bf16.mxu0 %v2573_v11 }
 0x294   : > { %2060 = vmatmul.mubr.msk.bf16.vlgmr.msra.gmra.mxu0 %vm879_vm3, %v873_v54 }
 0x295   : > { %2071 = vmatprep.mubr.msk.bf16.mxu0 %vm2574_vm2, %v2573_v11 }
 0x34c   : > { %v920_v55 = vpop.f32.mrf.mxu0 }
 0x34d   : > { %v975_v56 = vsel %vm879_vm3, %v920_v55, -inf }
 0x34e   : > { %976 = vmax.xlane.f32.xlu1 %v975_v56  ;;  %v2055_v57 = vpop.f32.mrf.mxu0 }
 0x350   : > { %v923_v58 = vpop.f32.mrf.mxu0 }
 0x352   : > { %v2056_v59 = vpop.f32.mrf.mxu0 }
 0x354   : > { %v969_v60 = vpop.f32.mrf.mxu0 }
 0x355   : > { %v978_v61 = vsel %vm879_vm3, %v969_v60, -inf }
 0x356   : > { %979 = vmax.xlane.f32.xlu0 %v978_v61  ;;  %v2061_v62 = vpop.f32.mrf.mxu0 }
 0x358   : > { %v972_v63 = vpop.f32.mrf.mxu0 }
 0x35a   : > { %v2062_v0 = vpop.f32.mrf.mxu0 }
 0x35f   : > { %1048 = vrot.lane.b32.xlu1 %v2947_v45, %s2576_s8 }
 0x363   : > { %1110 = vrot.lane.b32.xlu1 %v2944_v42, %s2577_s14 }
 0x3d7   : > { %v977_v1 = vpop.xlane.xlu1 %976 }
 0x3d8   : > { %v981_v4 = vsub.f32 %v920_v55, %v977_v1 }
 0x3da   : > { %v983_v5 = vmul.f32 1.442695, %v981_v4 }
 0x3db   : > { %v1049_v6 = vpop.permute.xlu1 %1048 }
 0x3dc   : > { %2266 = vpow2.f32 %v983_v5  ;;  %v1054_v7 = vsel %vm1004_vm4, %v1049_v6, 0 }
 0x3dd   : > { %2070 = vmatpush3.bf16.msra.mxu0 %v1054_v7 }
 0x3de   : > { %2081 = vmatprep.subr.bf16.mxu0 %v2573_v11 }
 0x3df   : > { %v980_v8 = vpop.xlane.xlu0 %979  ;;  %v1111_v17 = vpop.permute.xlu1 %1110 }
 0x3e0   : > { %v982_v9 = vsub.f32 %v969_v60, %v980_v8  ;;  %v1116_v24 = vsel %vm879_vm3, %v1111_v17, 0 }
 0x3e2   : > { %v985_v10 = vmul.f32 1.442695, %v982_v9 }
 0x3e4   : > { %2268 = vpow2.f32 %v985_v10 }
 0x3e9   : > { %v2267_v12 = vpop.eup %2266 }
 0x3ea   : > { %v987_v13 = vsel %vm879_vm3, %v2267_v12, 0.0 }
 0x3eb   : > { %988 = vadd.xlane.f32.xlu0 %v987_v13  ;;  %v2255_v13 = vld [vmem:[%s738_s12] sm:$0xff]   ;;  %s3228_s12 = scalar_lea.vmem [#allocation7], %s2847_s27 }
 0x3f1   : > { %v2269_v14 = vpop.eup %2268 }
 0x3f2   : > { %v990_v15 = vsel %vm879_vm3, %v2269_v14, 0.0 }
 0x3f3   : > { %991 = vadd.xlane.f32.xlu1 %v990_v15 }
 0x401   : > { %999 = vrot.lane.b32.xlu0 %v2944_v42, %s2576_s8 }
 0x404   : > { %1161 = vrot.lane.b32.xlu1 %v2947_v45, %s2577_s14 }
 0x405   : > { %1108 = vrot.lane.b32.xlu0 %v872_v51, %s2578_s4 }
 0x408   : > { %1159 = vrot.lane.b32.xlu1 %v873_v54, %s2578_s4 }
 0x474   : > { %v989_v16 = vpop.xlane.xlu0 %988 }
 0x475   : > { %2270 = vrcp.f32 %v989_v16 }
 0x478   : > { %v1000_v18 = vpop.permute.xlu0 %999 }
 0x479   : > { %v1006_v19 = vsel %vm1004_vm4, %v1000_v18, 0 }
 0x47a   : > { %2064 = vmatpush3.bf16.msra.mxu1 %v1006_v19 }
 0x47b   : > { %2075 = vmatprep.subr.bf16.mxu1 %v2573_v11 }
 0x47c   : > { %v992_v20 = vpop.xlane.xlu1 %991  ;;  %v1109_v29 = vpop.permute.xlu0 %1108 }
 0x47d   : > { %2272 = vrcp.f32 %v992_v20 }
 0x480   : > { %v1162_v27 = vpop.permute.xlu1 %1161 }
 0x481   : > { %v1167_v30 = vsel %vm879_vm3, %v1162_v27, 0 }
 0x482   : > { %v2271_v21 = vpop.eup %2270 }
 0x483   : > { %v995_v22 = vmul.f32 %v2271_v21, %v2267_v12 }
 0x484   : > { %v1160_v31 = vpop.permute.xlu1 %1159 }
 0x485   : > { %v997_v23 = vpack.c.bf16 %v995_v22, %v995_v22 }
 0x487   : > { %2066 = vmatmul.mubr.msk.bf16.vlgmr.msra.gmra.mxu1 %vm879_vm3, %v997_v23 }
 0x488   : > { %2076 = vmatpush3.bf16.xpose.msra.mxu1 %v1116_v24  ;;  %2077 = vmatprep.mubr.msk.bf16.mxu1 %vm2574_vm2, %v2573_v11 }
 0x489   : > { %2087 = vmatprep.subr.bf16.mxu1 %v2573_v11 }
 0x48a   : > { %v2273_v25 = vpop.eup %2272 }
 0x48b   : > { %v996_v26 = vmul.f32 %v2273_v25, %v2269_v14 }
 0x48d   : > { %v998_v28 = vpack.c.bf16 %v996_v26, %v996_v26 }
 0x48f   : > { %2072 = vmatmul.mubr.msk.bf16.vlgmr.msra.gmra.mxu0 %vm879_vm3, %v998_v28  ;;  %2078 = vmatmul.mubr.msk.bf16.vlgmr.msra.gmra.mxu1 %vm879_vm3, %v1109_v29  ;;  %v1989_v28 = vld [vmem:[%s3228_s12] ss:$0 sm:$0xff] }
 0x490   : > { %2082 = vmatpush3.bf16.xpose.msra.mxu0 %v1167_v30  ;;  %2083 = vmatprep.mubr.msk.bf16.mxu0 %vm2574_vm2, %v2573_v11 }
 0x491   : > { %2093 = vmatprep.subr.bf16.mxu0 %v2573_v11  ;;  %2089 = vmatprep.mubr.msk.bf16.mxu1 %vm2574_vm2, %v2573_v11 }
 0x497   : > { %2084 = vmatmul.mubr.msk.bf16.vlgmr.msra.gmra.mxu0 %vm879_vm3, %v1160_v31 }
 0x498   : > { %2095 = vmatprep.mubr.msk.bf16.mxu0 %vm2574_vm2, %v2573_v11 }
 0x547   : > { %v1042_v32 = vpop.f32.mrf.mxu1 }
 0x548   : > { %v2013_v33 = vpack.c.bf16 %v1042_v32, %v1042_v32 }
 0x549   : > { %v2067_v34 = vpop.f32.mrf.mxu1 }
 0x54a   : > { %1105 = vst.msk [vmem:[#allocation3] sm:$0xf] %vm1104_vm5, %v2013_v33 }
 0x54b   : > { %v1045_v35 = vpop.f32.mrf.mxu1 }
 0x54d   : > { %v2068_v36 = vpop.f32.mrf.mxu1 }
 0x54f   : > { %v1090_v37 = vpop.f32.mrf.mxu0  ;;  %v1152_v38 = vpop.f32.mrf.mxu1 }
 0x550   : > { %v2014_v39 = vpack.c.bf16 %v1090_v37, %v1090_v37  ;;  %v1209_v40 = vsel %vm879_vm3, %v1152_v38, -inf }
 0x551   : > { %1210 = vmax.xlane.f32.xlu0 %v1209_v40  ;;  %v2073_v41 = vpop.f32.mrf.mxu0  ;;  %v2079_v43 = vpop.f32.mrf.mxu1  ;;  %v2257_v40 = vld [vmem:[%s743_s13] sm:$0xff]   ;;  %s3230_s13 = scalar_lea.vmem [#allocation9], %s2847_s27 }
 0x552   : > { %1106 = vst.msk [vmem:[#allocation3 + $0x4] sm:$0xf] %vm1104_vm5, %v2014_v39 }
 0x553   : > { %v1093_v44 = vpop.f32.mrf.mxu0  ;;  %v1155_v46 = vpop.f32.mrf.mxu1 }
 0x555   : > { %v2074_v47 = vpop.f32.mrf.mxu0  ;;  %v2080_v48 = vpop.f32.mrf.mxu1 }
 0x557   : > { %v1203_v49 = vpop.f32.mrf.mxu0 }
 0x558   : > { %v1212_v50 = vsel %vm879_vm3, %v1203_v49, -inf }
 0x559   : > { %1213 = vmax.xlane.f32.xlu1 %v1212_v50  ;;  %v2085_v51 = vpop.f32.mrf.mxu0 }
 0x55b   : > { %v1206_v52 = vpop.f32.mrf.mxu0 }
 0x55d   : > { %v2086_v53 = vpop.f32.mrf.mxu0 }
 0x56a   : > { %1281 = vrot.lane.b32.xlu1 %v2947_v45, %s2579_s28 }
 0x5da   : > { %v1211_v54 = vpop.xlane.xlu0 %1210 }
 0x5db   : > { %v1215_v55 = vsub.f32 %v1152_v38, %v1211_v54 }
 0x5dd   : > { %v1217_v56 = vmul.f32 1.442695, %v1215_v55 }
 0x5df   : > { %2274 = vpow2.f32 %v1217_v56 }
 0x5e2   : > { %v1214_v57 = vpop.xlane.xlu1 %1213 }
 0x5e3   : > { %v1216_v58 = vsub.f32 %v1203_v49, %v1214_v57 }
 0x5e5   : > { %v1219_v59 = vmul.f32 1.442695, %v1216_v58 }
 0x5e6   : > { %v1282_v60 = vpop.permute.xlu1 %1281 }
 0x5e7   : > { %2276 = vpow2.f32 %v1219_v59  ;;  %v1287_v61 = vsel %vm1004_vm4, %v1282_v60, 0 }
 0x5e8   : > { %2094 = vmatpush3.bf16.msra.mxu0 %v1287_v61 }
 0x5e9   : > { %2105 = vmatprep.subr.bf16.mxu0 %v2573_v11 }
 0x5ec   : > { %v2275_v62 = vpop.eup %2274 }
 0x5ed   : > { %v1221_v63 = vsel %vm879_vm3, %v2275_v62, 0.0 }
 0x5ee   : > { %1222 = vadd.xlane.f32.xlu0 %v1221_v63 }
 0x5f4   : > { %v2277_v0 = vpop.eup %2276 }
 0x5f5   : > { %v1224_v45 = vsel %vm879_vm3, %v2277_v0, 0.0 }
 0x5f6   : > { %1225 = vadd.xlane.f32.xlu0 %v1224_v45 }
 0x60c   : > { %1233 = vrot.lane.b32.xlu0 %v2944_v42, %s2579_s28 }
 0x677   : > { %v1223_v1 = vpop.xlane.xlu0 %1222 }
 0x678   : > { %2278 = vrcp.f32 %v1223_v1 }
 0x67f   : > { %v1226_v4 = vpop.xlane.xlu0 %1225 }
 0x680   : > { %2280 = vrcp.f32 %v1226_v4  ;;  %v1991_v4 = vld [vmem:[%s3231_s7] ss:$0 sm:$0xff] }
 0x683   : > { %v1234_v5 = vpop.permute.xlu0 %1233 }
 0x684   : > { %v1239_v6 = vsel %vm1004_vm4, %v1234_v5, 0 }
 0x685   : > { %v2279_v7 = vpop.eup %2278  ;;  %2088 = vmatpush3.bf16.msra.mxu1 %v1239_v6 }
 0x686   : > { %v1229_v8 = vmul.f32 %v2279_v7, %v2275_v62  ;;  %2099 = vmatprep.subr.bf16.mxu1 %v2573_v11  ;;  %v1990_v62 = vld [vmem:[%s3230_s13] ss:$0 sm:$0xff] }
 0x688   : > { %v1231_v9 = vpack.c.bf16 %v1229_v8, %v1229_v8 }
 0x68a   : > { %2090 = vmatmul.mubr.msk.bf16.vlgmr.msra.gmra.mxu1 %vm879_vm3, %v1231_v9  ;;  %v2258_v9 = vld [vmem:[%s2901_s11 + $0x18] sm:$0xff]  }
 0x68b   : > { %2101 = vmatprep.mubr.msk.bf16.mxu1 %vm2574_vm2, %v2573_v11  ;;  %2100 = vmatpush3.bf16.msra.mxu1 %v2255_v13  ;;  %v1992_v13 = vld [vmem:[%s629_s17] ss:$0 sm:$0xff] }
 0x68c   : > { %2111 = vmatprep.subr.bf16.mxu1 %v2573_v11 }
 0x68d   : > { %v2281_v42 = vpop.eup %2280 }
 0x68e   : > { %v1230_v10 = vmul.f32 %v2281_v42, %v2277_v0  ;;  %v2259_v42 = vld [vmem:[%s2901_s11 + $0x10] sm:$0xff]  }
 0x690   : > { %v1232_v12 = vpack.c.bf16 %v1230_v10, %v1230_v10  ;;  %v2260_v10 = vld [vmem:[%s2901_s11 + $0x8] sm:$0xff]  }
 0x692   : > { %2096 = vmatmul.mubr.msk.bf16.vlgmr.msra.gmra.mxu0 %vm879_vm3, %v1232_v12  ;;  %v2261_v12 = vld [vmem:[%s2901_s11] sm:$0xff]  }
 0x693   : > { %2107 = vmatprep.mubr.msk.bf16.mxu0 %vm2574_vm2, %v2573_v11  ;;  %2106 = vmatpush3.bf16.msra.mxu0 %v2257_v40 }
 0x74a   : > { %v1275_v14 = vpop.f32.mrf.mxu1 }
 0x74b   : > { %v2015_v15 = vpack.c.bf16 %v1275_v14, %v1275_v14 }
 0x74c   : > { %v2091_v16 = vpop.f32.mrf.mxu1 }
 0x74d   : > { %1335 = vrot.lane.b32.xlu1 %v2015_v15, %s2580_s18 }
 0x74e   : > { %v1278_v17 = vpop.f32.mrf.mxu1 }
 0x750   : > { %v2092_v18 = vpop.f32.mrf.mxu1 }
 0x752   : > { %v1323_v19 = vpop.f32.mrf.mxu0 }
 0x753   : > { %v2016_v20 = vpack.c.bf16 %v1323_v19, %v1323_v19 }
 0x754   : > { %v2097_v21 = vpop.f32.mrf.mxu0 }
 0x755   : > { %1337 = vrot.lane.b32.xlu1 %v2016_v20, %s2580_s18 }
 0x756   : > { %v1326_v22 = vpop.f32.mrf.mxu0 }
 0x758   : > { %v2098_v23 = vpop.f32.mrf.mxu0 }
 0x7bf   : > { %v1336_v24 = vpop.permute.xlu1 %1335 }
 0x7c0   : > { %1342 = vst.msk [vmem:[#allocation3] sm:$0xf] %vm1341_vm6, %v1336_v24 }
 0x7c7   : > { %v1338_v25 = vpop.permute.xlu1 %1337 }
 0x7c8   : > { %1343 = vst.msk [vmem:[#allocation3 + $0x4] sm:$0xf] %vm1341_vm6, %v1338_v25 }
 0x7cf   : > { %v2256_v26 = vld [vmem:[#allocation3] sm:$0xff]  }
 0x7d0   : > { %2102 = vmatmul.mubr.msk.bf16.vlgmr.msra.gmra.mxu1 %vm767_vm1, %v2256_v26 }
 0x7d1   : > { %2119 = vmatprep.mubr.msk.bf16.mxu1 %vm2574_vm2, %v2573_v11  ;;  %2112 = vmatpush3.bf16.msra.mxu1 %v2258_v9 }
 0x7d2   : > { %2113 = vmatprep.subr.bf16.mxu1 %v2573_v11 }
 0x7d5   : > { %2114 = vmatpush3.bf16.msra.mxu1 %v2259_v42 }
 0x7d6   : > { %2115 = vmatprep.subr.bf16.mxu1 %v2573_v11 }
 0x7d9   : > { %2116 = vmatpush3.bf16.msra.mxu1 %v2260_v10 }
 0x7da   : > { %2117 = vmatprep.subr.bf16.mxu1 %v2573_v11 }
 0x7dd   : > { %2118 = vmatpush3.bf16.msra.mxu1 %v2261_v12 }
 0x890   : > { %v1396_v27 = vpop.f32.mrf.mxu1 }
 0x891   : > { %v1403_v29 = vadd.f32 %v1396_v27, %v2911_v2 }
 0x892   : > { %v2103_v30 = vpop.f32.mrf.mxu1 }
 0x893   : > { %v3018_v31 = vadd.f32 %v1989_v28, %v1403_v29 }
 0x894   : > { %v1399_v32 = vpop.f32.mrf.mxu1 }
 0x895   : > { %v1404_v33 = vadd.f32 %v1399_v32, %v2913_v3  ;;  %v1416_v34 = vsel %vm767_vm1, %v3018_v31, 0.0  ;;  %v1424_v35 = vmul.f32 %v3018_v31, %v3018_v31 }
 0x896   : > { %1417 = vadd.xlane.f32.xlu0 %v1416_v34  ;;  %v2104_v36 = vpop.f32.mrf.mxu1 }
 0x897   : > { %v3025_v37 = vadd.f32 %v1989_v28, %v1404_v33  ;;  %v1426_v38 = vsel %vm767_vm1, %v1424_v35, 0.0 }
 0x899   : > { %v1419_v2 = vsel %vm767_vm1, %v3025_v37, 0.0  ;;  %v1425_v39 = vmul.f32 %v3025_v37, %v3025_v37 }
 0x89a   : > { %1427 = vadd.xlane.f32.xlu0 %v1426_v38  ;;  %1420 = vadd.xlane.f32.xlu1 %v1419_v2 }
 0x89b   : > { %v1429_v3 = vsel %vm767_vm1, %v1425_v39, 0.0  ;;  %v1995_v39 = vld [vmem:[%s751_s9] ss:$0 sm:$0xff] }
 0x89e   : > { %1430 = vadd.xlane.f32.xlu0 %v1429_v3 }
 0x91f   : > { %v1418_v41 = vpop.xlane.xlu0 %1417 }
 0x920   : > { %v1422_v43 = vmul.f32 0.0625, %v1418_v41 }
 0x922   : > { %v1434_v47 = vmul.f32 %v1422_v43, %v1422_v43  ;;  %v1440_v59 = vsub.f32 %v3018_v31, %v1422_v43 }
 0x923   : > { %v1428_v44 = vpop.xlane.xlu0 %1427  ;;  %v1421_v46 = vpop.xlane.xlu1 %1420 }
 0x924   : > { %v1432_v48 = vmul.f32 0.0625, %v1428_v44  ;;  %v1423_v49 = vmul.f32 0.0625, %v1421_v46 }
 0x926   : > { %v1436_v50 = vsub.f32 %v1432_v48, %v1434_v47  ;;  %v1435_v53 = vmul.f32 %v1423_v49, %v1423_v49  ;;  %v1441_v63 = vsub.f32 %v3025_v37, %v1423_v49 }
 0x927   : > { %v1431_v51 = vpop.xlane.xlu0 %1430 }
 0x928   : > { %v1438_v52 = vmax.f32 %v1436_v50, 0.0  ;;  %v1433_v54 = vmul.f32 0.0625, %v1431_v51 }
 0x92a   : > { %v1442_v55 = vadd.f32 1e-05, %v1438_v52  ;;  %v1437_v56 = vsub.f32 %v1433_v54, %v1435_v53 }
 0x92c   : > { %2282 = vrsqrt.f32 %v1442_v55  ;;  %v1439_v57 = vmax.f32 %v1437_v56, 0.0 }
 0x92e   : > { %v1443_v58 = vadd.f32 1e-05, %v1439_v57 }
 0x930   : > { %2284 = vrsqrt.f32 %v1443_v58 }
 0x939   : > { %v2283_v60 = vpop.eup %2282 }
 0x93a   : > { %v1446_v61 = vmul.f32 %v2283_v60, %v1440_v59 }
 0x93c   : > { %v1454_v1 = vmul.f32 %v1990_v62, %v1446_v61 }
 0x93d   : > { %v2285_v0 = vpop.eup %2284 }
 0x93e   : > { %v1447_v45 = vmul.f32 %v2285_v0, %v1441_v63  ;;  %v1462_v6 = vadd.f32 %v1991_v4, %v1454_v1 }
 0x940   : > { %v1455_v5 = vmul.f32 %v1990_v62, %v1447_v45 }
 0x942   : > { %v1463_v7 = vadd.f32 %v1991_v4, %v1455_v5 }
 0x944   : > { %v1464_v8 = vpack.c.bf16 %v1463_v7, %v1462_v6 }
 0x946   : > { %2108 = vmatmul.mubr.msk.bf16.vlgmr.msra.gmra.mxu0 %vm767_vm1, %v1464_v8 }
 0xa06   : > { %v1517_v14 = vpop.f32.mrf.mxu0 }
 0xa07   : > { %v1518_v15 = vadd.f32 %v1992_v13, %v1517_v14 }
 0xa08   : > { %v2109_v16 = vpop.f32.mrf.mxu0 }
 0xa09   : > { %v1524_v17 = vmul.f32 %v1518_v15, %v1518_v15 }
 0xa0a   : > { %v1520_v18 = vpop.f32.mrf.mxu0 }
 0xa0b   : > { %v1526_v19 = vmul.f32 %v1524_v17, %v1518_v15  ;;  %v1521_v20 = vadd.f32 %v1992_v13, %v1520_v18 }
 0xa0c   : > { %v2110_v21 = vpop.f32.mrf.mxu0 }
 0xa0d   : > { %v1528_v22 = vmul.f32 0.044715, %v1526_v19  ;;  %v1525_v23 = vmul.f32 %v1521_v20, %v1521_v20 }
 0xa0f   : > { %v1530_v24 = vadd.f32 %v1528_v22, %v1518_v15  ;;  %v1527_v25 = vmul.f32 %v1525_v23, %v1521_v20 }
 0xa11   : > { %v1532_v26 = vmul.f32 0.7978846, %v1530_v24  ;;  %v1529_v27 = vmul.f32 0.044715, %v1527_v25 }
 0xa13   : > { %2286 = vtanh.f32 %v1532_v26  ;;  %v1531_v11 = vadd.f32 %v1529_v27, %v1521_v20 }
 0xa15   : > { %v1533_v28 = vmul.f32 0.7978846, %v1531_v11 }
 0xa17   : > { %2288 = vtanh.f32 %v1533_v28 }
 0xa20   : > { %v2287_v29 = vpop.eup %2286 }
 0xa21   : > { %v1536_v30 = vadd.f32 1.0, %v2287_v29 }
 0xa23   : > { %v1538_v33 = vmul.f32 0.5, %v1536_v30 }
 0xa24   : > { %v2289_v32 = vpop.eup %2288 }
 0xa25   : > { %v1537_v34 = vadd.f32 1.0, %v2289_v32  ;;  %v1540_v36 = vmul.f32 %v1538_v33, %v1518_v15 }
 0xa27   : > { %v1539_v35 = vmul.f32 0.5, %v1537_v34 }
 0xa29   : > { %v1541_v38 = vmul.f32 %v1539_v35, %v1521_v20 }
 0xa2b   : > { %v1542_v2 = vpack.c.bf16 %v1541_v38, %v1540_v36 }
 0xa2d   : > { %2120 = vmatmul.mubr.msk.bf16.vlgmr.msra.gmra.mxu1 %vm1582_vm7, %v1542_v2 }
 0xaed   : > { %v1620_v3 = vpop.f32.mrf.mxu1 }
 0xaee   : > { %v1621_v40 = vadd.f32 %v1995_v39, %v1620_v3 }
 0xaef   : > { %v2121_v41 = vpop.f32.mrf.mxu1 }
 0xaf0   : > { %v1627_v43 = vadd.f32 %v1621_v40, %v3018_v31 }
 0xaf1   : > { %v1623_v44 = vpop.f32.mrf.mxu1 }
 0xaf2   : > { %1629 = vst.msk [vmem:[#allocation2] sm:$0xff] %vm767_vm1, %v1627_v43  ;;  %v1624_v46 = vadd.f32 %v1995_v39, %v1623_v44  ;;  %1634 = sbr.rel (%p2001_p3) target bundleno = 3140 (0xc44), region = 104 }
 0xaf3   : > { %v2122_v47 = vpop.f32.mrf.mxu1 }
 0xaf4   : > { %v1628_v48 = vadd.f32 %v1624_v46, %v3025_v37 }
 0xaf6   : > { %1630 = vst.msk [vmem:[#allocation2 + $0x8] sm:$0xff] %vm767_vm1, %v1628_v48 }
 0xaf7   : > { %v1637_v49 = vsel %vm767_vm1, %v1627_v43, 0.0  ;;  %v1645_v50 = vmul.f32 %v1627_v43, %v1627_v43  ;;  %v1646_v51 = vmul.f32 %v1628_v48, %v1628_v48  ;;  %v1640_v31 = vsel %vm767_vm1, %v1628_v48, 0.0  ;;  %v2002_v8 = vld [vmem:[%s3233_s15] ss:$0 sm:$0xff] }
 0xaf8   : > { %1638 = vadd.xlane.f32.xlu0 %v1637_v49  ;;  %v2003_v42 = vld [vmem:[%s3234_s1] ss:$0 sm:$0xff] }
 0xaf9   : > { %v1647_v52 = vsel %vm767_vm1, %v1645_v50, 0.0  ;;  %v1650_v53 = vsel %vm767_vm1, %v1646_v51, 0.0 }
 0xafa   : > { %1648 = vadd.xlane.f32.xlu1 %v1647_v52 }
 0xafc   : > { %1641 = vadd.xlane.f32.xlu0 %v1640_v31 }
 0xafe   : > { %1651 = vadd.xlane.f32.xlu1 %v1650_v53 }
 0xb81   : > { %v1639_v37 = vpop.xlane.xlu0 %1638 }
 0xb82   : > { %v1643_v54 = vmul.f32 0.0625, %v1639_v37 }
 0xb83   : > { %v1649_v55 = vpop.xlane.xlu1 %1648 }
 0xb84   : > { %v1655_v56 = vmul.f32 %v1643_v54, %v1643_v54  ;;  %v1653_v57 = vmul.f32 0.0625, %v1649_v55  ;;  %v1661_v6 = vsub.f32 %v1627_v43, %v1643_v54 }
 0xb85   : > { %v1642_v58 = vpop.xlane.xlu0 %1641 }
 0xb86   : > { %v1657_v59 = vsub.f32 %v1653_v57, %v1655_v56  ;;  %v1644_v60 = vmul.f32 0.0625, %v1642_v58 }
 0xb87   : > { %v1652_v61 = vpop.xlane.xlu1 %1651 }
 0xb88   : > { %v1659_v62 = vmax.f32 %v1657_v59, 0.0  ;;  %v1656_v63 = vmul.f32 %v1644_v60, %v1644_v60  ;;  %v1654_v0 = vmul.f32 0.0625, %v1652_v61  ;;  %v1662_v10 = vsub.f32 %v1628_v48, %v1644_v60 }
 0xb8a   : > { %v1663_v45 = vadd.f32 1e-05, %v1659_v62  ;;  %v1658_v1 = vsub.f32 %v1654_v0, %v1656_v63 }
 0xb8c   : > { %2290 = vrsqrt.f32 %v1663_v45  ;;  %v1660_v4 = vmax.f32 %v1658_v1, 0.0 }
 0xb8e   : > { %v1664_v5 = vadd.f32 1e-05, %v1660_v4 }
 0xb90   : > { %2292 = vrsqrt.f32 %v1664_v5 }
 0xb99   : > { %v2291_v7 = vpop.eup %2290 }
 0xb9a   : > { %v1667_v9 = vmul.f32 %v2291_v7, %v1661_v6 }
 0xb9c   : > { %v1675_v12 = vmul.f32 %v2002_v8, %v1667_v9 }
 0xb9d   : > { %v2293_v13 = vpop.eup %2292 }
 0xb9e   : > { %v1683_v14 = vadd.f32 %v2003_v42, %v1675_v12  ;;  %v1668_v15 = vmul.f32 %v2293_v13, %v1662_v10 }
 0xba0   : > { %v1685_v16 = vmul.f32 %v1683_v14, %v1683_v14  ;;  %v1676_v17 = vmul.f32 %v2002_v8, %v1668_v15 }
 0xba2   : > { %v1687_v18 = vsel %vm767_vm1, %v1685_v16, 0.0  ;;  %v1684_v19 = vadd.f32 %v2003_v42, %v1676_v17 }
 0xba3   : > { %1688 = vadd.xlane.f32.xlu0 %v1687_v18 }
 0xba4   : > { %v1686_v20 = vmul.f32 %v1684_v19, %v1684_v19 }
 0xba6   : > { %v1690_v21 = vsel %vm767_vm1, %v1686_v20, 0.0 }
 0xba7   : > { %1691 = vadd.xlane.f32.xlu1 %v1690_v21 }
 0xc2c   : > { %v1689_v22 = vpop.xlane.xlu0 %1688 }
 0xc2d   : > { %v1693_v23 = vmax.f32 %v1689_v22, 1e-24 }
 0xc2f   : > { %2294 = vrsqrt.f32 %v1693_v23 }
 0xc30   : > { %v1692_v24 = vpop.xlane.xlu1 %1691 }
 0xc31   : > { %v1694_v25 = vmax.f32 %v1692_v24, 1e-24 }
 0xc33   : > { %2296 = vrsqrt.f32 %v1694_v25 }
 0xc3c   : > { %v2295_v26 = vpop.eup %2294 }
 0xc3d   : > { %v1697_v27 = vmul.f32 %v2295_v26, %v1683_v14 }
 0xc3f   : > { %1699 = vst.msk [vmem:[%s2908_s16] sm:$0xff] %vm767_vm1, %v1697_v27 }
 0xc40   : > { %v2297_v11 = vpop.eup %2296 }
 0xc41   : > { %v1698_v28 = vmul.f32 %v2297_v11, %v1684_v19 }
 0xc43   : > { %1700 = vst.msk [vmem:[%s2908_s16 + $0x8] sm:$0xff] %vm767_vm1, %v1698_v28 }
 0xc44 PF: > { %s2017_s21 = sshll.u32 %s2554_s20, 8  ;;  %s3236_s14 = sld [smem:[#allocation43_spill]] }
 0xc45   : > { %s1715_s28 = sshll.u32 %s2908_s16, 4  ;;  %s3237_s10 = sand.u32 1, %s2530_s30   ;;  %s3087_s28 = int_to_ptr.vmem [resolvable:$true] %s1715_s28 }
 0xc46   : > { %s3091_s5 = scalar_lea.sflag [#allocation6], %s3237_s10  ;;  %s2438_s25 = scalar_lea.vmem %s3087_s28, 256 }
 0xc47   : > { %p2439_p6 = scmp.ne.s32.totalorder %s3087_s28, %s2438_s25  ;;  %s2581_s20 = smov [#allocation13]  }
 0xc48   : > { %s2442_s12 = sshll.u32 %s2581_s20, 4  ;;  %s2443_s12 = int_to_ptr.vmem [resolvable:$false] %s2442_s12 }
 0xc49   : > { %p2440_p13 = pnand %p2439_p6, %p2750_p12  ;;  %s2444_s26 = scalar_lea.vmem %s2443_s12, 512 }
 0xc4a   : > { %s3084_s4 = scalar_lea.hbm %s3236_s14, %s2017_s21  ;;  %p2445_p1 = scmp.lt.s32.totalorder %s3087_s28, %s2443_s12 }
 0xc4b   : > { %p2441_p0 = pneg %p2440_p13  ;;  %p2446_p9 = scmp.lt.s32.totalorder %s2444_s26, %s2438_s25 }
 0xc4d   : > { %p2447_p10 = por %p2446_p9, %p2445_p1 }
 0xc4f   : > { %p2448_p11 = pnand %p2447_p10, %p2441_p0 }
 0xc51   : > { %2451 = shalt.err (!%p2448_p11)
}
 0xc52   : > { %s2452_s16 = scalar_lea.hbm %s3084_s4, 256  ;;  %s2456_s13 = scalar_lea.hbm %s3236_s14, 512 }
 0xc53   : > { %p2453_p5 = scmp.ne.s32.totalorder %s3084_s4, %s2452_s16  ;;  %p2457_p8 = scmp.lt.s32.totalorder %s3084_s4, %s3236_s14 }
 0xc54   : > { %p2458_p3 = scmp.lt.s32.totalorder %s2456_s13, %s2452_s16 }
 0xc55   : > { %p2454_p4 = pnand %p2453_p5, %p2750_p12 }
 0xc56   : > { %p2459_p6 = por %p2458_p3, %p2457_p8 }
 0xc57   : > { %p2455_p7 = pneg %p2454_p4 }
 0xc59   : > { %p2460_p13 = pnand %p2459_p6, %p2455_p7 }
 0xc5b   : > { %2463 = shalt.err (!%p2460_p13)
}
 0xc5c   : > { %s2582_s27 = smov 128  }
 0xc5d   : > { %2133 = dma.vmem_to_hbm [thread:$0]  (%p2750_p12), %s3087_s28, 256, %s3084_s4, %s3091_s5, %s2582_s27, %s2582_s27, %s2580_s18  }
 0xc5e PF: > { %s3238_s11 = sld [smem:[#allocation24_spill]] }
 0xc5f   : > { %s3239_s9 = sld [smem:[#allocation18_spill]] }
 0xc64   : > { %p2156_p0 = scmp.ge.s32.totalorder %s3238_s11, 2 }
 0xc65   : > { %s1730_s15 = sand.u32 1, %s3239_s9  }
 0xc66   : > { %p2152_p1 = pnand %p2156_p0, %p2760_p2  ;;  %s1731_s23 = scalar_lea.sflag [#allocation6], %s1730_s15 }
 0xc68   : > { %p2153_p9 = pneg %p2152_p1 }
 0xc6a   : > { %2521 = dma.done.wait (%p2153_p9), %s1731_s23, 256  }
 0xc6b   : > { %2523 = vsyncadd (%p2153_p9), %s1731_s23, 4294967040  ;;  %s36_s23 = sadd.s32 1, %s3238_s11   ;;  %s3241_s0 = sld [smem:[#allocation19_spill]] }
 0xc6c   : > { %p33_p10 = scmp.ge.s32.totalorder %s36_s23, 6   ;;  %s3242_s15 = sld [smem:[#allocation28_spill]] }
 0xc6d   : > { %s3243_s16 = sld [smem:[#allocation20_spill]]  ;;  %s3250_s29 = smov %s2530_s30 }
 0xc6e   : > { %s3244_s17 = sld [smem:[#allocation21_spill]] }
 0xc6f   : > { %s3245_s18 = sld [smem:[#allocation27_spill]]  ;;  %35 = sbr.rel (!%p33_p10) target bundleno = 27 (0x1b), region = 198 }
 0xc70   : > { %s3246_s19 = sld [smem:[#allocation22_spill]] }
 0xc71   : > { %s3247_s20 = sld [smem:[#allocation23_spill]]  ;;  %s3251_s30 = smov %s3241_s0 }
 0xc72   : > { %s3248_s21 = sld [smem:[#allocation25_spill]] }
 0xc73   : > { %s3249_s22 = sld [smem:[#allocation26_spill]] }
 0xc74   :  { %1736 = vsyncpa [#allocation5], 1 }
 0xc75   :  { %1738 = vsyncpa [#allocation5 + $0x1], 1 }
 0xc76   :  { %1739 = vsyncpa [#allocation8], 1 }
 0xc77   :  { %1741 = vsyncpa [#allocation8 + $0x1], 1 }
 0xc78   :  { %1742 = vsyncpa [#allocation11], 1 }
 0xc79   :  { %1744 = vsyncpa [#allocation11 + $0x1], 1 }
 0xc7a   :  { %1745 = vsyncpa [#allocation6], 1 }
 0xc7b   :  { %1747 = vsyncpa [#allocation6 + $0x1], 1 }

</bundles_post_ra>
